<compile_context>
chip_gen: v5e
topology: v5e:2x2
jax: 0.10.0
libtpu: 0.0.40
codegen_flags: <defaults>
</compile_context>

<pallas_src>
import jax
import jax.numpy as jnp
from jax.experimental import pallas as pl
from jax.experimental.pallas import tpu as pltpu


def _make_unshuffle_kernel(k, H, W, Cb):
    kk = k * k

    def kernel(g_ref, s_ref, x_ref, o_ref):
        # g_ref : (Hk, Hk)        fused one-hot row permutation  (VMEM-resident)
        # s_ref : (k, Wk, W)      per-dx one-hot column selection (VMEM-resident)
        # x_ref : (1, Cb, Hk, Wk) input channel block for batch n
        # o_ref : (1, Cb*k*k, H, W) contiguous output channel block
        g = g_ref[...]
        s_list = [s_ref[dx] for dx in range(k)]          # k x (Wk, W)

        for c in range(Cb):                               # unrolled (static Cb)
            plane = x_ref[0, c]                           # (Hk, Wk)
            # rows[dy*H + h, :] = plane[h*k + dy, :]
            rows = jnp.dot(
                g, plane,
                preferred_element_type=jnp.float32,
                precision=jax.lax.Precision.HIGHEST,
            ).astype(plane.dtype)                         # exact (one-hot weights)
            for dx in range(k):
                # sub[dy*H + h, w] = plane[h*k + dy, w*k + dx]
                sub = jnp.dot(
                    rows, s_list[dx],
                    preferred_element_type=jnp.float32,
                    precision=jax.lax.Precision.HIGHEST,
                )                                         # (Hk, W)
                for dy in range(k):
                    o_ref[0, c * kk + dy * k + dx] = (
                        sub[dy * H:(dy + 1) * H, :].astype(o_ref.dtype))

    return kernel


def pixel_unshuffle_pallas(x, downscale_factor):
    """x: (N, C, H*k, W*k) float (NCHW). Returns (N, C*k*k, H, W), same dtype."""
    k = int(downscale_factor)
    N, C, Hk, Wk = x.shape
    assert Hk % k == 0 and Wk % k == 0
    H, W = Hk // k, Wk // k
    kk = k * k
    dtype = x.dtype

    # --- channel blocking: largest divisor of C whose input block (Cb, Hk, Wk)
    # stays under ~4 MiB => <~16 MiB total with double-buffered in+out blocks,
    # safe on v7x (64 MiB VMEM) and comfortably inside v5e/v6e limits.
    itemsize = jnp.dtype(dtype).itemsize
    cb_cap = max(1, (4 << 20) // (Hk * Wk * itemsize))
    cb_cap = min(cb_cap, C, 64)                     # 64 also bounds in-kernel unroll
    Cb = 1
    for d in range(1, C + 1):
        if C % d == 0 and d <= cb_cap:
            Cb = d

    # --- constant one-hot selection matrices (same 0/1 "kernel" as the PyTorch
    # grouped conv), built once on host, DMA'd once (constant index maps).
    # G (Hk, Hk): (G @ plane)[dy*H + h, :] = plane[h*k + dy, :]
    r = jnp.arange(Hk, dtype=jnp.int32)
    src_row = (r % H) * k + r // H
    g = (src_row[:, None] == jnp.arange(Hk, dtype=jnp.int32)[None, :]).astype(dtype)
    # S (k, Wk, W): (rows @ S[dx])[:, w] = rows[:, w*k + dx]
    cin = jnp.arange(Wk, dtype=jnp.int32)
    w_idx = jnp.arange(W, dtype=jnp.int32)
    s = jnp.stack(
        [(cin[:, None] == (w_idx[None, :] * k + dx)).astype(dtype) for dx in range(k)],
        axis=0)                                                        # (k, Wk, W)

    grid = (N, C // Cb)
    kernel = _make_unshuffle_kernel(k, H, W, Cb)

    out = pl.pallas_call(
        kernel,
        out_shape=jax.ShapeDtypeStruct((N, C * kk, H, W), dtype),
        grid=grid,
        in_specs=[
            pl.BlockSpec((Hk, Hk), lambda n, cb: (0, 0)),
            pl.BlockSpec((k, Wk, W), lambda n, cb: (0, 0, 0)),
            pl.BlockSpec((1, Cb, Hk, Wk), lambda n, cb: (n, cb, 0, 0)),
        ],
        # the k*k output channels of each input channel are contiguous, so the
        # whole (n, cb) step writes one dense (1, Cb*k*k, H, W) block.
        out_specs=pl.BlockSpec((1, Cb * kk, H, W), lambda n, cb: (n, cb, 0, 0)),
        compiler_params=pltpu.CompilerParams(
            dimension_semantics=("parallel", "parallel"),
            vmem_limit_bytes=48 << 20,
        ),
    )(g, s, x)
    return out


def pixel_unshuffle_reference(x, downscale_factor):
    """Plain-JAX reference of the PyTorch forward (reshape + transpose)."""
    k = downscale_factor
    N, C, Hk, Wk = x.shape
    H, W = Hk // k, Wk // k
    x6 = x.reshape(N, C, H, k, W, k)
    return jnp.transpose(x6, (0, 1, 3, 5, 2, 4)).reshape(N, C * k * k, H, W)


if __name__ == "__main__":
    key = jax.random.PRNGKey(0)
    N, C, Hk, Wk, k = 2, 4, 16, 16, 2

    x = jax.random.normal(key, (N, C, Hk, Wk), jnp.float32)
    out = pixel_unshuffle_pallas(x, k)
    jax.block_until_ready(out)

    ref = pixel_unshuffle_reference(x, k)
    assert out.shape == (N, C * k * k, Hk // k, Wk // k)
    assert jnp.allclose(out, ref, atol=1e-6, rtol=1e-6), \
        float(jnp.max(jnp.abs(out - ref)))

    # second config: non-power-of-two channel count, larger plane
    x2 = jax.random.normal(jax.random.PRNGKey(1), (1, 3, 32, 32), jnp.float32)
    out2 = pixel_unshuffle_pallas(x2, 2)
    jax.block_until_ready(out2)
    ref2 = pixel_unshuffle_reference(x2, 2)
    assert jnp.allclose(out2, ref2, atol=1e-6, rtol=1e-6), \
        float(jnp.max(jnp.abs(out2 - ref2)))

    print("KERNEL_OK")
</pallas_src>

<mosaic_0001>
module attributes {stable_mosaic.version = 11 : i64} {
  func.func @kernel(%arg0: i32, %arg1: i32, %arg2: memref<16x16xf32, #tpu.memory_space<vmem>>, %arg3: memref<2x16x8xf32, #tpu.memory_space<vmem>>, %arg4: memref<1x4x16x16xf32, #tpu.memory_space<vmem>>, %arg5: memref<1x16x8x8xf32, #tpu.memory_space<vmem>>) attributes {dimension_semantics = [#tpu.dimension_semantics<parallel>, #tpu.dimension_semantics<parallel>], iteration_bounds = array<i64: 2, 1>, scalar_prefetch = 0 : i64, scratch_operands = 0 : i64, tpu.core_type = #tpu.core_type<tc>, window_params = [{pipeline_mode = #tpu.pipeline_mode<synchronous>, transform_indices = @transform_0, window_bounds = array<i64: 16, 16>}, {pipeline_mode = #tpu.pipeline_mode<synchronous>, transform_indices = @transform_1, window_bounds = array<i64: 2, 16, 8>}, {transform_indices = @transform_2, window_bounds = array<i64: 1, 4, 16, 16>}, {transform_indices = @transform_3, window_bounds = array<i64: 1, 16, 8, 8>}]} {
    %c0 = arith.constant 0 : index
    %c0_0 = arith.constant 0 : index
    %0 = vector.load %arg2[%c0, %c0_0] : memref<16x16xf32, #tpu.memory_space<vmem>>, vector<16x16xf32>
    %c0_1 = arith.constant 0 : index
    %c0_2 = arith.constant 0 : index
    %c0_3 = arith.constant 0 : index
    %1 = vector.load %arg3[%c0_1, %c0_2, %c0_3] : memref<2x16x8xf32, #tpu.memory_space<vmem>>, vector<1x16x8xf32>
    %2 = vector.shape_cast %1 : vector<1x16x8xf32> to vector<16x8xf32>
    %c1 = arith.constant 1 : index
    %c0_4 = arith.constant 0 : index
    %c0_5 = arith.constant 0 : index
    %3 = vector.load %arg3[%c1, %c0_4, %c0_5] : memref<2x16x8xf32, #tpu.memory_space<vmem>>, vector<1x16x8xf32>
    %4 = vector.shape_cast %3 : vector<1x16x8xf32> to vector<16x8xf32>
    %c0_6 = arith.constant 0 : index
    %c0_7 = arith.constant 0 : index
    %c0_8 = arith.constant 0 : index
    %c0_9 = arith.constant 0 : index
    %5 = vector.load %arg4[%c0_6, %c0_7, %c0_8, %c0_9] : memref<1x4x16x16xf32, #tpu.memory_space<vmem>>, vector<1x1x16x16xf32>
    %6 = vector.shape_cast %5 : vector<1x1x16x16xf32> to vector<16x16xf32>
    %cst = arith.constant dense<0.000000e+00> : vector<16x16xf32>
    %7 = tpu.matmul %0, %6, %cst {dimension_numbers = #tpu.dot_dimension_numbers<[1], [0], [0], [1], [0, 0, 1, 1], [], []>, precision = #tpu.contract_precision<fp32>} : vector<16x16xf32>, vector<16x16xf32>, vector<16x16xf32> -> vector<16x16xf32>
    %cst_10 = arith.constant dense<0.000000e+00> : vector<16x8xf32>
    %8 = tpu.matmul %7, %2, %cst_10 {dimension_numbers = #tpu.dot_dimension_numbers<[1], [0], [0], [1], [0, 0, 1, 1], [], []>, precision = #tpu.contract_precision<fp32>} : vector<16x16xf32>, vector<16x8xf32>, vector<16x8xf32> -> vector<16x8xf32>
    %9 = vector.extract_strided_slice %8 {offsets = [0, 0], sizes = [8, 8], strides = [1, 1]} : vector<16x8xf32> to vector<8x8xf32>
    %c0_11 = arith.constant 0 : index
    %c0_12 = arith.constant 0 : index
    %c0_13 = arith.constant 0 : index
    %c0_14 = arith.constant 0 : index
    %10 = vector.load %arg5[%c0_11, %c0_12, %c0_13, %c0_14] : memref<1x16x8x8xf32, #tpu.memory_space<vmem>>, vector<1x1x8x8xf32>
    %11 = vector.shape_cast %10 : vector<1x1x8x8xf32> to vector<8x8xf32>
    %12 = vector.shape_cast %9 : vector<8x8xf32> to vector<1x1x8x8xf32>
    tpu.vector_store %arg5[%c0_11, %c0_12, %c0_13, %c0_14], %12 {strides = array<i32>} : memref<1x16x8x8xf32, #tpu.memory_space<vmem>>, vector<1x1x8x8xf32>,
    %13 = vector.extract_strided_slice %8 {offsets = [8, 0], sizes = [8, 8], strides = [1, 1]} : vector<16x8xf32> to vector<8x8xf32>
    %c0_15 = arith.constant 0 : index
    %c2 = arith.constant 2 : index
    %c0_16 = arith.constant 0 : index
    %c0_17 = arith.constant 0 : index
    %14 = vector.load %arg5[%c0_15, %c2, %c0_16, %c0_17] : memref<1x16x8x8xf32, #tpu.memory_space<vmem>>, vector<1x1x8x8xf32>
    %15 = vector.shape_cast %14 : vector<1x1x8x8xf32> to vector<8x8xf32>
    %16 = vector.shape_cast %13 : vector<8x8xf32> to vector<1x1x8x8xf32>
    tpu.vector_store %arg5[%c0_15, %c2, %c0_16, %c0_17], %16 {strides = array<i32>} : memref<1x16x8x8xf32, #tpu.memory_space<vmem>>, vector<1x1x8x8xf32>,
    %cst_18 = arith.constant dense<0.000000e+00> : vector<16x8xf32>
    %17 = tpu.matmul %7, %4, %cst_18 {dimension_numbers = #tpu.dot_dimension_numbers<[1], [0], [0], [1], [0, 0, 1, 1], [], []>, precision = #tpu.contract_precision<fp32>} : vector<16x16xf32>, vector<16x8xf32>, vector<16x8xf32> -> vector<16x8xf32>
    %18 = vector.extract_strided_slice %17 {offsets = [0, 0], sizes = [8, 8], strides = [1, 1]} : vector<16x8xf32> to vector<8x8xf32>
    %c0_19 = arith.constant 0 : index
    %c1_20 = arith.constant 1 : index
    %c0_21 = arith.constant 0 : index
    %c0_22 = arith.constant 0 : index
    %19 = vector.load %arg5[%c0_19, %c1_20, %c0_21, %c0_22] : memref<1x16x8x8xf32, #tpu.memory_space<vmem>>, vector<1x1x8x8xf32>
    %20 = vector.shape_cast %19 : vector<1x1x8x8xf32> to vector<8x8xf32>
    %21 = vector.shape_cast %18 : vector<8x8xf32> to vector<1x1x8x8xf32>
    tpu.vector_store %arg5[%c0_19, %c1_20, %c0_21, %c0_22], %21 {strides = array<i32>} : memref<1x16x8x8xf32, #tpu.memory_space<vmem>>, vector<1x1x8x8xf32>,
    %22 = vector.extract_strided_slice %17 {offsets = [8, 0], sizes = [8, 8], strides = [1, 1]} : vector<16x8xf32> to vector<8x8xf32>
    %c0_23 = arith.constant 0 : index
    %c3 = arith.constant 3 : index
    %c0_24 = arith.constant 0 : index
    %c0_25 = arith.constant 0 : index
    %23 = vector.load %arg5[%c0_23, %c3, %c0_24, %c0_25] : memref<1x16x8x8xf32, #tpu.memory_space<vmem>>, vector<1x1x8x8xf32>
    %24 = vector.shape_cast %23 : vector<1x1x8x8xf32> to vector<8x8xf32>
    %25 = vector.shape_cast %22 : vector<8x8xf32> to vector<1x1x8x8xf32>
    tpu.vector_store %arg5[%c0_23, %c3, %c0_24, %c0_25], %25 {strides = array<i32>} : memref<1x16x8x8xf32, #tpu.memory_space<vmem>>, vector<1x1x8x8xf32>,
    %c0_26 = arith.constant 0 : index
    %c1_27 = arith.constant 1 : index
    %c0_28 = arith.constant 0 : index
    %c0_29 = arith.constant 0 : index
    %26 = vector.load %arg4[%c0_26, %c1_27, %c0_28, %c0_29] : memref<1x4x16x16xf32, #tpu.memory_space<vmem>>, vector<1x1x16x16xf32>
    %27 = vector.shape_cast %26 : vector<1x1x16x16xf32> to vector<16x16xf32>
    %cst_30 = arith.constant dense<0.000000e+00> : vector<16x16xf32>
    %28 = tpu.matmul %0, %27, %cst_30 {dimension_numbers = #tpu.dot_dimension_numbers<[1], [0], [0], [1], [0, 0, 1, 1], [], []>, precision = #tpu.contract_precision<fp32>} : vector<16x16xf32>, vector<16x16xf32>, vector<16x16xf32> -> vector<16x16xf32>
    %cst_31 = arith.constant dense<0.000000e+00> : vector<16x8xf32>
    %29 = tpu.matmul %28, %2, %cst_31 {dimension_numbers = #tpu.dot_dimension_numbers<[1], [0], [0], [1], [0, 0, 1, 1], [], []>, precision = #tpu.contract_precision<fp32>} : vector<16x16xf32>, vector<16x8xf32>, vector<16x8xf32> -> vector<16x8xf32>
    %30 = vector.extract_strided_slice %29 {offsets = [0, 0], sizes = [8, 8], strides = [1, 1]} : vector<16x8xf32> to vector<8x8xf32>
    %c0_32 = arith.constant 0 : index
    %c4 = arith.constant 4 : index
    %c0_33 = arith.constant 0 : index
    %c0_34 = arith.constant 0 : index
    %31 = vector.load %arg5[%c0_32, %c4, %c0_33, %c0_34] : memref<1x16x8x8xf32, #tpu.memory_space<vmem>>, vector<1x1x8x8xf32>
    %32 = vector.shape_cast %31 : vector<1x1x8x8xf32> to vector<8x8xf32>
    %33 = vector.shape_cast %30 : vector<8x8xf32> to vector<1x1x8x8xf32>
    tpu.vector_store %arg5[%c0_32, %c4, %c0_33, %c0_34], %33 {strides = array<i32>} : memref<1x16x8x8xf32, #tpu.memory_space<vmem>>, vector<1x1x8x8xf32>,
    %34 = vector.extract_strided_slice %29 {offsets = [8, 0], sizes = [8, 8], strides = [1, 1]} : vector<16x8xf32> to vector<8x8xf32>
    %c0_35 = arith.constant 0 : index
    %c6 = arith.constant 6 : index
    %c0_36 = arith.constant 0 : index
    %c0_37 = arith.constant 0 : index
    %35 = vector.load %arg5[%c0_35, %c6, %c0_36, %c0_37] : memref<1x16x8x8xf32, #tpu.memory_space<vmem>>, vector<1x1x8x8xf32>
    %36 = vector.shape_cast %35 : vector<1x1x8x8xf32> to vector<8x8xf32>
    %37 = vector.shape_cast %34 : vector<8x8xf32> to vector<1x1x8x8xf32>
    tpu.vector_store %arg5[%c0_35, %c6, %c0_36, %c0_37], %37 {strides = array<i32>} : memref<1x16x8x8xf32, #tpu.memory_space<vmem>>, vector<1x1x8x8xf32>,
    %cst_38 = arith.constant dense<0.000000e+00> : vector<16x8xf32>
    %38 = tpu.matmul %28, %4, %cst_38 {dimension_numbers = #tpu.dot_dimension_numbers<[1], [0], [0], [1], [0, 0, 1, 1], [], []>, precision = #tpu.contract_precision<fp32>} : vector<16x16xf32>, vector<16x8xf32>, vector<16x8xf32> -> vector<16x8xf32>
    %39 = vector.extract_strided_slice %38 {offsets = [0, 0], sizes = [8, 8], strides = [1, 1]} : vector<16x8xf32> to vector<8x8xf32>
    %c0_39 = arith.constant 0 : index
    %c5 = arith.constant 5 : index
    %c0_40 = arith.constant 0 : index
    %c0_41 = arith.constant 0 : index
    %40 = vector.load %arg5[%c0_39, %c5, %c0_40, %c0_41] : memref<1x16x8x8xf32, #tpu.memory_space<vmem>>, vector<1x1x8x8xf32>
    %41 = vector.shape_cast %40 : vector<1x1x8x8xf32> to vector<8x8xf32>
    %42 = vector.shape_cast %39 : vector<8x8xf32> to vector<1x1x8x8xf32>
    tpu.vector_store %arg5[%c0_39, %c5, %c0_40, %c0_41], %42 {strides = array<i32>} : memref<1x16x8x8xf32, #tpu.memory_space<vmem>>, vector<1x1x8x8xf32>,
    %43 = vector.extract_strided_slice %38 {offsets = [8, 0], sizes = [8, 8], strides = [1, 1]} : vector<16x8xf32> to vector<8x8xf32>
    %c0_42 = arith.constant 0 : index
    %c7 = arith.constant 7 : index
    %c0_43 = arith.constant 0 : index
    %c0_44 = arith.constant 0 : index
    %44 = vector.load %arg5[%c0_42, %c7, %c0_43, %c0_44] : memref<1x16x8x8xf32, #tpu.memory_space<vmem>>, vector<1x1x8x8xf32>
    %45 = vector.shape_cast %44 : vector<1x1x8x8xf32> to vector<8x8xf32>
    %46 = vector.shape_cast %43 : vector<8x8xf32> to vector<1x1x8x8xf32>
    tpu.vector_store %arg5[%c0_42, %c7, %c0_43, %c0_44], %46 {strides = array<i32>} : memref<1x16x8x8xf32, #tpu.memory_space<vmem>>, vector<1x1x8x8xf32>,
    %c0_45 = arith.constant 0 : index
    %c2_46 = arith.constant 2 : index
    %c0_47 = arith.constant 0 : index
    %c0_48 = arith.constant 0 : index
    %47 = vector.load %arg4[%c0_45, %c2_46, %c0_47, %c0_48] : memref<1x4x16x16xf32, #tpu.memory_space<vmem>>, vector<1x1x16x16xf32>
    %48 = vector.shape_cast %47 : vector<1x1x16x16xf32> to vector<16x16xf32>
    %cst_49 = arith.constant dense<0.000000e+00> : vector<16x16xf32>
    %49 = tpu.matmul %0, %48, %cst_49 {dimension_numbers = #tpu.dot_dimension_numbers<[1], [0], [0], [1], [0, 0, 1, 1], [], []>, precision = #tpu.contract_precision<fp32>} : vector<16x16xf32>, vector<16x16xf32>, vector<16x16xf32> -> vector<16x16xf32>
    %cst_50 = arith.constant dense<0.000000e+00> : vector<16x8xf32>
    %50 = tpu.matmul %49, %2, %cst_50 {dimension_numbers = #tpu.dot_dimension_numbers<[1], [0], [0], [1], [0, 0, 1, 1], [], []>, precision = #tpu.contract_precision<fp32>} : vector<16x16xf32>, vector<16x8xf32>, vector<16x8xf32> -> vector<16x8xf32>
    %51 = vector.extract_strided_slice %50 {offsets = [0, 0], sizes = [8, 8], strides = [1, 1]} : vector<16x8xf32> to vector<8x8xf32>
    %c0_51 = arith.constant 0 : index
    %c8 = arith.constant 8 : index
    %c0_52 = arith.constant 0 : index
    %c0_53 = arith.constant 0 : index
    %52 = vector.load %arg5[%c0_51, %c8, %c0_52, %c0_53] : memref<1x16x8x8xf32, #tpu.memory_space<vmem>>, vector<1x1x8x8xf32>
    %53 = vector.shape_cast %52 : vector<1x1x8x8xf32> to vector<8x8xf32>
    %54 = vector.shape_cast %51 : vector<8x8xf32> to vector<1x1x8x8xf32>
    tpu.vector_store %arg5[%c0_51, %c8, %c0_52, %c0_53], %54 {strides = array<i32>} : memref<1x16x8x8xf32, #tpu.memory_space<vmem>>, vector<1x1x8x8xf32>,
    %55 = vector.extract_strided_slice %50 {offsets = [8, 0], sizes = [8, 8], strides = [1, 1]} : vector<16x8xf32> to vector<8x8xf32>
    %c0_54 = arith.constant 0 : index
    %c10 = arith.constant 10 : index
    %c0_55 = arith.constant 0 : index
    %c0_56 = arith.constant 0 : index
    %56 = vector.load %arg5[%c0_54, %c10, %c0_55, %c0_56] : memref<1x16x8x8xf32, #tpu.memory_space<vmem>>, vector<1x1x8x8xf32>
    %57 = vector.shape_cast %56 : vector<1x1x8x8xf32> to vector<8x8xf32>
    %58 = vector.shape_cast %55 : vector<8x8xf32> to vector<1x1x8x8xf32>
    tpu.vector_store %arg5[%c0_54, %c10, %c0_55, %c0_56], %58 {strides = array<i32>} : memref<1x16x8x8xf32, #tpu.memory_space<vmem>>, vector<1x1x8x8xf32>,
    %cst_57 = arith.constant dense<0.000000e+00> : vector<16x8xf32>
    %59 = tpu.matmul %49, %4, %cst_57 {dimension_numbers = #tpu.dot_dimension_numbers<[1], [0], [0], [1], [0, 0, 1, 1], [], []>, precision = #tpu.contract_precision<fp32>} : vector<16x16xf32>, vector<16x8xf32>, vector<16x8xf32> -> vector<16x8xf32>
    %60 = vector.extract_strided_slice %59 {offsets = [0, 0], sizes = [8, 8], strides = [1, 1]} : vector<16x8xf32> to vector<8x8xf32>
    %c0_58 = arith.constant 0 : index
    %c9 = arith.constant 9 : index
    %c0_59 = arith.constant 0 : index
    %c0_60 = arith.constant 0 : index
    %61 = vector.load %arg5[%c0_58, %c9, %c0_59, %c0_60] : memref<1x16x8x8xf32, #tpu.memory_space<vmem>>, vector<1x1x8x8xf32>
    %62 = vector.shape_cast %61 : vector<1x1x8x8xf32> to vector<8x8xf32>
    %63 = vector.shape_cast %60 : vector<8x8xf32> to vector<1x1x8x8xf32>
    tpu.vector_store %arg5[%c0_58, %c9, %c0_59, %c0_60], %63 {strides = array<i32>} : memref<1x16x8x8xf32, #tpu.memory_space<vmem>>, vector<1x1x8x8xf32>,
    %64 = vector.extract_strided_slice %59 {offsets = [8, 0], sizes = [8, 8], strides = [1, 1]} : vector<16x8xf32> to vector<8x8xf32>
    %c0_61 = arith.constant 0 : index
    %c11 = arith.constant 11 : index
    %c0_62 = arith.constant 0 : index
    %c0_63 = arith.constant 0 : index
    %65 = vector.load %arg5[%c0_61, %c11, %c0_62, %c0_63] : memref<1x16x8x8xf32, #tpu.memory_space<vmem>>, vector<1x1x8x8xf32>
    %66 = vector.shape_cast %65 : vector<1x1x8x8xf32> to vector<8x8xf32>
    %67 = vector.shape_cast %64 : vector<8x8xf32> to vector<1x1x8x8xf32>
    tpu.vector_store %arg5[%c0_61, %c11, %c0_62, %c0_63], %67 {strides = array<i32>} : memref<1x16x8x8xf32, #tpu.memory_space<vmem>>, vector<1x1x8x8xf32>,
    %c0_64 = arith.constant 0 : index
    %c3_65 = arith.constant 3 : index
    %c0_66 = arith.constant 0 : index
    %c0_67 = arith.constant 0 : index
    %68 = vector.load %arg4[%c0_64, %c3_65, %c0_66, %c0_67] : memref<1x4x16x16xf32, #tpu.memory_space<vmem>>, vector<1x1x16x16xf32>
    %69 = vector.shape_cast %68 : vector<1x1x16x16xf32> to vector<16x16xf32>
    %cst_68 = arith.constant dense<0.000000e+00> : vector<16x16xf32>
    %70 = tpu.matmul %0, %69, %cst_68 {dimension_numbers = #tpu.dot_dimension_numbers<[1], [0], [0], [1], [0, 0, 1, 1], [], []>, precision = #tpu.contract_precision<fp32>} : vector<16x16xf32>, vector<16x16xf32>, vector<16x16xf32> -> vector<16x16xf32>
    %cst_69 = arith.constant dense<0.000000e+00> : vector<16x8xf32>
    %71 = tpu.matmul %70, %2, %cst_69 {dimension_numbers = #tpu.dot_dimension_numbers<[1], [0], [0], [1], [0, 0, 1, 1], [], []>, precision = #tpu.contract_precision<fp32>} : vector<16x16xf32>, vector<16x8xf32>, vector<16x8xf32> -> vector<16x8xf32>
    %72 = vector.extract_strided_slice %71 {offsets = [0, 0], sizes = [8, 8], strides = [1, 1]} : vector<16x8xf32> to vector<8x8xf32>
    %c0_70 = arith.constant 0 : index
    %c12 = arith.constant 12 : index
    %c0_71 = arith.constant 0 : index
    %c0_72 = arith.constant 0 : index
    %73 = vector.load %arg5[%c0_70, %c12, %c0_71, %c0_72] : memref<1x16x8x8xf32, #tpu.memory_space<vmem>>, vector<1x1x8x8xf32>
    %74 = vector.shape_cast %73 : vector<1x1x8x8xf32> to vector<8x8xf32>
    %75 = vector.shape_cast %72 : vector<8x8xf32> to vector<1x1x8x8xf32>
    tpu.vector_store %arg5[%c0_70, %c12, %c0_71, %c0_72], %75 {strides = array<i32>} : memref<1x16x8x8xf32, #tpu.memory_space<vmem>>, vector<1x1x8x8xf32>,
    %76 = vector.extract_strided_slice %71 {offsets = [8, 0], sizes = [8, 8], strides = [1, 1]} : vector<16x8xf32> to vector<8x8xf32>
    %c0_73 = arith.constant 0 : index
    %c14 = arith.constant 14 : index
    %c0_74 = arith.constant 0 : index
    %c0_75 = arith.constant 0 : index
    %77 = vector.load %arg5[%c0_73, %c14, %c0_74, %c0_75] : memref<1x16x8x8xf32, #tpu.memory_space<vmem>>, vector<1x1x8x8xf32>
    %78 = vector.shape_cast %77 : vector<1x1x8x8xf32> to vector<8x8xf32>
    %79 = vector.shape_cast %76 : vector<8x8xf32> to vector<1x1x8x8xf32>
    tpu.vector_store %arg5[%c0_73, %c14, %c0_74, %c0_75], %79 {strides = array<i32>} : memref<1x16x8x8xf32, #tpu.memory_space<vmem>>, vector<1x1x8x8xf32>,
    %cst_76 = arith.constant dense<0.000000e+00> : vector<16x8xf32>
    %80 = tpu.matmul %70, %4, %cst_76 {dimension_numbers = #tpu.dot_dimension_numbers<[1], [0], [0], [1], [0, 0, 1, 1], [], []>, precision = #tpu.contract_precision<fp32>} : vector<16x16xf32>, vector<16x8xf32>, vector<16x8xf32> -> vector<16x8xf32>
    %81 = vector.extract_strided_slice %80 {offsets = [0, 0], sizes = [8, 8], strides = [1, 1]} : vector<16x8xf32> to vector<8x8xf32>
    %c0_77 = arith.constant 0 : index
    %c13 = arith.constant 13 : index
    %c0_78 = arith.constant 0 : index
    %c0_79 = arith.constant 0 : index
    %82 = vector.load %arg5[%c0_77, %c13, %c0_78, %c0_79] : memref<1x16x8x8xf32, #tpu.memory_space<vmem>>, vector<1x1x8x8xf32>
    %83 = vector.shape_cast %82 : vector<1x1x8x8xf32> to vector<8x8xf32>
    %84 = vector.shape_cast %81 : vector<8x8xf32> to vector<1x1x8x8xf32>
    tpu.vector_store %arg5[%c0_77, %c13, %c0_78, %c0_79], %84 {strides = array<i32>} : memref<1x16x8x8xf32, #tpu.memory_space<vmem>>, vector<1x1x8x8xf32>,
    %85 = vector.extract_strided_slice %80 {offsets = [8, 0], sizes = [8, 8], strides = [1, 1]} : vector<16x8xf32> to vector<8x8xf32>
    %c0_80 = arith.constant 0 : index
    %c15 = arith.constant 15 : index
    %c0_81 = arith.constant 0 : index
    %c0_82 = arith.constant 0 : index
    %86 = vector.load %arg5[%c0_80, %c15, %c0_81, %c0_82] : memref<1x16x8x8xf32, #tpu.memory_space<vmem>>, vector<1x1x8x8xf32>
    %87 = vector.shape_cast %86 : vector<1x1x8x8xf32> to vector<8x8xf32>
    %88 = vector.shape_cast %85 : vector<8x8xf32> to vector<1x1x8x8xf32>
    tpu.vector_store %arg5[%c0_80, %c15, %c0_81, %c0_82], %88 {strides = array<i32>} : memref<1x16x8x8xf32, #tpu.memory_space<vmem>>, vector<1x1x8x8xf32>,
    return
  }
  func.func @transform_0(%arg0: i32, %arg1: i32) -> (i32, i32) {
    %c0_i32 = arith.constant 0 : i32
    %c0_i32_0 = arith.constant 0 : i32
    %c0_i32_1 = arith.constant 0 : i32
    return %c0_i32, %c0_i32_0 : i32, i32
  }
  func.func @transform_1(%arg0: i32, %arg1: i32) -> (i32, i32, i32) {
    %c0_i32 = arith.constant 0 : i32
    %c0_i32_0 = arith.constant 0 : i32
    %c0_i32_1 = arith.constant 0 : i32
    %c0_i32_2 = arith.constant 0 : i32
    return %c0_i32, %c0_i32_0, %c0_i32_1 : i32, i32, i32
  }
  func.func @transform_2(%arg0: i32, %arg1: i32) -> (i32, i32, i32, i32) {
    %c0_i32 = arith.constant 0 : i32
    %c0_i32_0 = arith.constant 0 : i32
    %c0_i32_1 = arith.constant 0 : i32
    return %arg0, %arg1, %c0_i32, %c0_i32_0 : i32, i32, i32, i32
  }
  func.func @transform_3(%arg0: i32, %arg1: i32) -> (i32, i32, i32, i32) {
    %c0_i32 = arith.constant 0 : i32
    %c0_i32_0 = arith.constant 0 : i32
    %c0_i32_1 = arith.constant 0 : i32
    return %arg0, %arg1, %c0_i32, %c0_i32_0 : i32, i32, i32, i32
  }
}

</mosaic_0001>

<bundles_post_ra>
// kernel: tpu_custom_call.1
= control target key start
LH: loop header
LB: loop body
LE: loop exit
PB: predicated region body
PF: predicated region fallthrough
CT: control target
= control target key end

     0   :  { %8 = vsyncpa [#allocation3], 0  ;;  %s3298_s0 = inlined_call_operand.vmem [shape: f32[16,16], index: 0, kind: input, shape index: {}]   ;;  %s3299_s1 = inlined_call_operand.vmem [shape: f32[2,16,8], index: 1, kind: input, shape index: {}]   ;;  %s3300_s2 = inlined_call_operand.hbm [shape: f32[2,4,16,16], index: 2, kind: input, shape index: {}]   ;;  %s3301_s3 = inlined_call_operand.vmem [shape: f32[2,16,8,8], index: 3, kind: output, shape index: {}]  }
   0x1   :  { %10 = vsyncpa [#allocation3 + $0x1], 0  ;;  %s2877_s12 = smov 0   ;;  %s2879_s13 = smov 0  }
   0x2   :  { %s2881_s14 = smov 0   ;;  %s2883_s15 = smov 0  }
   0x3   :  { %s2885_s16 = smov 0   ;;  %s2887_s17 = smov 0  }
   0x4 LB: > { %s2678_s18 = sadd.s32 4294967295, %s2853_s17   ;;  %s28_s19 = sadd.s32 1, %s2849_s16  ;;  %s2853_s17 = sphi %s2887_s17, %s16_s17   ;;  %s2849_s16 = sphi %s2885_s16, %s3308_s16   ;;  %s2845_s15 = sphi %s2883_s15, %s3307_s15   ;;  %s2841_s14 = sphi %s2881_s14, %s3306_s14   ;;  %s2837_s13 = sphi %s2879_s13, %s3305_s13   ;;  %s2833_s12 = sphi %s2877_s12, %s3304_s12  }
   0x5   : > { %p30_p0 = scmp.ge.s32.totalorder %s28_s19, 2  ;;  %s79_s20 = sadd.s32 1, %s2841_s14 }
   0x6   : > { %p86_p1 = scmp.ne.s32.totalorder %s2841_s14, %s2837_s13  ;;  %p87_p2 = scmp.eq.s32.totalorder %s2853_s17, 0 }
   0x7   : > { %s3310_s19 = smov (%p30_p0, %s28_s19), 0  ;;  %p92_p4 = scmp.ne.s32.totalorder %s2837_s13, %s2833_s12 }
   0x8   : > { %p2913_p3 = por %p87_p2, %p86_p1  ;;  %s74_s22 = ssub.s32 %s2849_s16, %s3310_s19 }
   0x9   : > { %p93_p5 = scmp.eq.s32.totalorder %s2678_s18, 0  ;;  %p77_p6 = scmp.eq.s32.totalorder %s74_s22, 0 }
   0xa   : > { %p2722_p8 = scmp.lt.s32.totalorder %s2853_s17, 2  ;;  %s150_s25 = sand.u32 1, %s2841_s14  }
   0xb   : > { %p2920_p7 = por %p93_p5, %p92_p4  ;;  %s2714_s26 = sshll.u32 %s2849_s16, 6 }
   0xc   : > { %s2926_s24 = scalar_select %p77_p6, %s2841_s14, %s79_s20  }
   0xd   : > { %s2682_s27 = sshll.u32 %s150_s25, 6  ;;  %s162_s30 = scalar_lea.hbm %s3300_s2, %s2714_s26 }
   0xe   : > { %s163_s4 = sshll.u32 %s162_s30, 4  ;;  %s154_s5 = scalar_lea.vmem [#allocation2], %s2682_s27  ;;  %s164_s4 = int_to_ptr.hbm [resolvable:$true] %s163_s4 }
   0xf   : > { %s165_s6 = sshll.u32 %s154_s5, 4  ;;  %p2719_p9 = pnand %p2722_p8, %p2913_p3  ;;  %s166_s6 = int_to_ptr.vmem [resolvable:$true] %s165_s6 }
  0x10   : > { %p2685_p10 = scmp.ge.s32.totalorder %s2853_s17, 1  ;;  %p173_p11 = scmp.lt.s32.totalorder %s2853_s17, 3 }
  0x11   : > { %s151_s7 = scalar_lea.sflag [#allocation3], %s150_s25  ;;  %s2855_s8 = smov 128  }
  0x12   : > { %s2856_s9 = smov 8   ;;  %p174_p12 = pnand %p2685_p10, %p173_p11 }
  0x13   : > { %2721 = dma.hbm_to_vmem [thread:$0]  (!%p2719_p9), %s164_s4, 1024, %s166_s6, %s151_s7, %s2855_s8, %s2855_s8, %s2856_s9  }
  0x14   : > { %177 = sbr.rel (%p174_p12) target bundleno = 998 (0x3e6), region = 32  ;;  %s179_s10 = sand.u32 (!%p174_p12), 1, %s2837_s13  }
  0x15   : > { %s2686_s11 = sshll.u32 (!%p174_p12), %s179_s10, 6  ;;  %s180_s12 = scalar_lea.sflag (!%p174_p12), [#allocation3], %s179_s10 }
  0x16   : > { %s2938_s18 = scalar_lea.vmem (!%p174_p12), [#allocation2], %s2686_s11 }
  0x19   : > { %2828 = dma.done.wait (%p2920_p7), %s180_s12, 1024  }
  0x1a   : > { %2830 = vsyncadd (%p2920_p7), %s180_s12, 4294966272  ;;  %vm231_vm0 = vcmask 130048   ;;  %v230_v0 = vld [vmem:[%s2938_s18 + $0x8] sm:$0xff]  ;;  %v229_v1 = vld [vmem:[%s2938_s18] sm:$0xff]  ;;  %p213_p13 = scmp.lt.s32.totalorder %s2845_s15, 1  ;;  %vm624_vm1 = vcmask 64512  }
  0x1b   : > { %v222_v2 = vld [vmem:[%s3298_s0] sm:$0xff]  ;;  %v252_v3 = vand.u32 4294901760, %v230_v0  ;;  %v254_v4 = vand.u32 4294901760, %v229_v1  ;;  %v223_v6 = vld [vmem:[%s3298_s0 + $0x8] sm:$0xff]  ;;  %v2690_v38 = vld [vmem:[%s3299_s1 + $0x18] sm:$0xff] }
  0x1c   : > { %v233_v5 = vsel %vm231_vm0, %v222_v2, 0  ;;  %v236_v8 = vsel %vm231_vm0, %v223_v6, 0  ;;  %v225_v26 = vld [vmem:[%s3299_s1 + $0x8] sm:$0xff]  ;;  %v224_v28 = vld [vmem:[%s3299_s1] sm:$0xff]  ;;  %v3035_v39 = vand.u32 4294901760, %v2690_v38  ;;  %v2689_v41 = vld [vmem:[%s3299_s1 + $0x10] sm:$0xff] }
  0x1d   : > { %v2953_v7 = vand.u32 4294901760, %v233_v5  ;;  %v288_v9 = vsub.f32 %v230_v0, %v252_v3  ;;  %253 = vmatpush.msra.mxu0 %v252_v3  ;;  %v294_v10 = vsub.f32 %v229_v1, %v254_v4  ;;  %354 = vmatpush.msra.mxu3 %v252_v3  ;;  %v2956_v11 = vand.u32 4294901760, %v236_v8  ;;  %s3312_s15 = smov (!%p213_p13, %s2845_s15), 1 }
  0x1e   : > { %v2993_v27 = vand.u32 4294901760, %v225_v26  ;;  %v3002_v30 = vand.u32 4294901760, %v224_v28  ;;  %v3041_v42 = vand.u32 4294901760, %v2689_v41  ;;  %v3044_v43 = vsub.f32 %v2690_v38, %v3035_v39  ;;  %v2694_v38 = vld [vmem:[%s2938_s18 + $0x10] sm:$0xff]  ;;  %s2715_s6 = sshll.u32 %s3312_s15, 7 }
  0x1f   : > { %v2959_v12 = vsub.f32 %v233_v5, %v2953_v7  ;;  %324 = vmatpush.msra.mxu2 %v288_v9  ;;  %255 = vmatpush.msra.mxu0 %v254_v4  ;;  %v289_v13 = vand.u32 4294901760, %v288_v9  ;;  %v295_v14 = vand.u32 4294901760, %v294_v10  ;;  %v2962_v15 = vsub.f32 %v236_v8, %v2956_v11  ;;  %s3126_s9 = scalar_lea.vmem %s3301_s3, %s2715_s6 }
  0x20   : > { %356 = vmatpush.msra.mxu3 %v254_v4  ;;  %v3000_v29 = vsub.f32 %v225_v26, %v2993_v27  ;;  %v3009_v32 = vsub.f32 %v224_v28, %v3002_v30  ;;  %v3048_v45 = vand.u32 4294901760, %v3044_v43  ;;  %v3051_v46 = vsub.f32 %v2689_v41, %v3041_v42 }
  0x21   : > { %v2965_v16 = vand.u32 4294901760, %v2959_v12  ;;  %327 = vmatpush.msra.mxu2 %v294_v10  ;;  %v290_v17 = vsub.f32 %v288_v9, %v289_v13  ;;  %387 = vmatpush.msrb.mxu0 %v289_v13  ;;  %v296_v18 = vsub.f32 %v294_v10, %v295_v14  ;;  %v2972_v20 = vand.u32 4294901760, %v2962_v15 }
  0x22   : > { %330 = vmatmul.f32.vlgmr.msra.gmra.mxu2 %v2959_v12  ;;  %v3006_v31 = vand.u32 4294901760, %v3000_v29  ;;  %v3017_v34 = vand.u32 4294901760, %v3009_v32  ;;  %v680_v47 = vsub.f32 %v3044_v43, %v3048_v45  ;;  %v3056_v48 = vand.u32 4294901760, %v3051_v46 }
  0x23   : > { %v259_v19 = vsub.f32 %v2959_v12, %v2965_v16  ;;  %360 = vmatmul.f32.vlgmr.msra.gmra.mxu3 %v2965_v16  ;;  %v291_v21 = vand.u32 4294901760, %v290_v17  ;;  %v297_v22 = vand.u32 4294901760, %v296_v18  ;;  %391 = vmatpush.msrb.mxu0 %v295_v14  ;;  %v267_v24 = vsub.f32 %v2962_v15, %v2972_v20 }
  0x24   : > { %449 = vmatpush.msrb.mxu2 %v2993_v27  ;;  %v486_v33 = vsub.f32 %v3000_v29, %v3006_v31  ;;  %v492_v36 = vsub.f32 %v3009_v32, %v3017_v34  ;;  %v3058_v51 = vand.u32 4294901760, %v680_v47  ;;  %v686_v52 = vsub.f32 %v3051_v46, %v3056_v48 }
  0x25   : > { %v2974_v23 = vand.u32 4294901760, %v259_v19  ;;  %292 = vmatpush.msra.mxu1 %v291_v21  ;;  %v2981_v25 = vand.u32 4294901760, %v267_v24  ;;  %v2695_v24 = vld [vmem:[%s2938_s18 + $0x18] sm:$0xff]  ;;  %v841_v41 = vand.u32 4294901760, %v2694_v38 }
  0x26   : > { %451 = vmatpush.msrb.mxu2 %v3002_v30  ;;  %v3021_v35 = vand.u32 4294901760, %v486_v33  ;;  %v3027_v37 = vand.u32 4294901760, %v492_v36  ;;  %v3063_v54 = vand.u32 4294901760, %v686_v52  ;;  %v839_v26 = vand.u32 4294901760, %v2695_v24 }
  0x27   : > { %261 = vmatmul.f32.vlgmr.msra.gmra.mxu0 %v2974_v23  ;;  %298 = vmatpush.msra.mxu1 %v297_v22 }
  0x28   : > { %300 = vmatmul.f32.vlgmr.msra.gmra.mxu1 %v2953_v7  ;;  %520 = vmatpush.msra.mxu0 %v3000_v29  ;;  %v875_v33 = vsub.f32 %v2695_v24, %v839_v26 }
  0x29   : > { %416 = vmatpush.msrb.mxu1 %v252_v3  ;;  %583 = vmatpush.msra.mxu2 %v3006_v31 }
  0x2a   : > { %335 = vmatmul.f32.gmra.mxu2 %v2962_v15  ;;  %523 = vmatpush.msra.mxu0 %v3009_v32 }
  0x2b   : > { %366 = vmatmul.f32.gmra.mxu3 %v2972_v20  ;;  %418 = vmatpush.msrb.mxu1 %v254_v4 }
  0x2c   : > { %587 = vmatpush.msra.mxu2 %v3017_v34  ;;  %488 = vmatpush.msrb.mxu3 %v3021_v35 }
  0x2d   : > { %550 = vmatpush.msra.mxu1 %v2993_v27 }
  0x2e   : > { %494 = vmatpush.msrb.mxu3 %v3027_v37 }
  0x2f   : > { %269 = vmatmul.f32.gmra.mxu0 %v2981_v25  ;;  %552 = vmatpush.msra.mxu1 %v3002_v30 }
  0x30   : > { %304 = vmatmul.f32.gmra.mxu1 %v2956_v11  ;;  %612 = vmatpush.msra.mxu3 %v2993_v27 }
  0x32   : > { %614 = vmatpush.msra.mxu3 %v3002_v30 }
  0x37   : > { %393 = vmatmul.f32.vlgmr.msrb.gmra.mxu0 %v2953_v7 }
  0x38   : > { %420 = vmatmul.f32.vlgmr.msrb.gmra.mxu1 %v2953_v7  ;;  %643 = vmatpush.msrb.mxu0 %v3035_v39 }
  0x39   : > { %682 = vmatpush.msrb.mxu1 %v3058_v51 }
  0x3a   : > { %645 = vmatpush.msrb.mxu0 %v3041_v42 }
  0x3b   : > { %688 = vmatpush.msrb.mxu1 %v3063_v54 }
  0x3f   : > { %397 = vmatmul.f32.gmra.mxu0 %v2956_v11 }
  0x40   : > { %424 = vmatmul.f32.gmra.mxu1 %v2956_v11 }
  0xa4   : > { %v262_v40 = vpop.f32.mrf.mxu0 }
  0xa5   : > { %v301_v44 = vpop.f32.mrf.mxu1  ;;  %v331_v49 = vpop.f32.mrf.mxu2 }
  0xa6   : > { %v302_v50 = vadd.f32 %v301_v44, %v262_v40  ;;  %v361_v55 = vpop.f32.mrf.mxu3  ;;  %v876_v40 = vand.u32 4294901760, %v875_v33 }
  0xa8   : > { %v332_v57 = vadd.f32 %v331_v49, %v302_v50  ;;  %v877_v47 = vsub.f32 %v875_v33, %v876_v40  ;;  %v881_v49 = vsub.f32 %v2694_v38, %v841_v41 }
  0xaa   : > { %v362_v58 = vadd.f32 %v361_v55, %v332_v57  ;;  %v878_v50 = vand.u32 4294901760, %v877_v47  ;;  %v882_v52 = vand.u32 4294901760, %v881_v49 }
  0xac   : > { %v270_v53 = vpop.f32.mrf.mxu0 }
  0xad   : > { %v305_v56 = vpop.f32.mrf.mxu1  ;;  %v336_v60 = vpop.f32.mrf.mxu2 }
  0xae   : > { %v306_v59 = vadd.f32 %v305_v56, %v270_v53  ;;  %v367_v2 = vpop.f32.mrf.mxu3  ;;  %v883_v53 = vsub.f32 %v881_v49, %v882_v52 }
  0xb0   : > { %v337_v0 = vadd.f32 %v336_v60, %v306_v59  ;;  %v884_v55 = vand.u32 4294901760, %v883_v53 }
  0xb2   : > { %v368_v5 = vadd.f32 %v367_v2, %v337_v0 }
  0xb4   : > { %v394_v61 = vpop.f32.mrf.mxu0 }
  0xb5   : > { %v395_v62 = vadd.f32 %v394_v61, %v362_v58  ;;  %v421_v63 = vpop.f32.mrf.mxu1 }
  0xb7   : > { %v422_v1 = vadd.f32 %v421_v63, %v395_v62 }
  0xb9   : > { %v429_v3 = vsel %vm231_vm0, %v422_v1, 0 }
  0xba   : > { %v3067_v4 = vand.u32 4294901760, %v429_v3 }
  0xbc   : > { %v3070_v6 = vsub.f32 %v429_v3, %v3067_v4  ;;  %v398_v8 = vpop.f32.mrf.mxu0  ;;  %496 = vmatmul.f32.vlgmr.msrb.gmra.mxu3 %v3067_v4 }
  0xbd   : > { %v399_v9 = vadd.f32 %v398_v8, %v368_v5  ;;  %744 = vmatpush.msrb.mxu3 %v3035_v39  ;;  %v425_v10 = vpop.f32.mrf.mxu1 }
  0xbe   : > { %526 = vmatmul.f32.vlgmr.msra.gmra.mxu0 %v3070_v6  ;;  %v454_v13 = vand.u32 4294901760, %v3070_v6 }
  0xbf   : > { %v426_v14 = vadd.f32 %v425_v10, %v399_v9  ;;  %746 = vmatpush.msrb.mxu3 %v3041_v42  ;;  %777 = vmatpush.msra.mxu0 %v3048_v45 }
  0xc0   : > { %556 = vmatmul.f32.vlgmr.msra.gmra.mxu1 %v454_v13  ;;  %v455_v17 = vsub.f32 %v3070_v6, %v454_v13 }
  0xc1   : > { %v432_v18 = vsel %vm231_vm0, %v426_v14, 0  ;;  %781 = vmatpush.msra.mxu0 %v3056_v48  ;;  %806 = vmatpush.msra.mxu1 %v3035_v39 }
  0xc2   : > { %v460_v19 = vand.u32 4294901760, %v432_v18  ;;  %v456_v21 = vand.u32 4294901760, %v455_v17 }
  0xc3   : > { %808 = vmatpush.msra.mxu1 %v3041_v42 }
  0xc4   : > { %v461_v22 = vsub.f32 %v432_v18, %v460_v19  ;;  %457 = vmatmul.f32.vlgmr.msrb.gmra.mxu2 %v456_v21  ;;  %500 = vmatmul.f32.gmra.mxu3 %v460_v19 }
  0xc5   : > { %714 = vmatpush.msrb.mxu2 %v3044_v43 }
  0xc6   : > { %531 = vmatmul.f32.gmra.mxu0 %v461_v22  ;;  %v462_v28 = vand.u32 4294901760, %v461_v22 }
  0xc7   : > { %717 = vmatpush.msrb.mxu2 %v3051_v46 }
  0xc8   : > { %562 = vmatmul.f32.gmra.mxu1 %v462_v28  ;;  %v463_v36 = vsub.f32 %v461_v22, %v462_v28 }
  0xca   : > { %v464_v44 = vand.u32 4294901760, %v463_v36 }
  0xcc   : > { %465 = vmatmul.f32.gmra.mxu2 %v464_v44  ;;  %616 = vmatmul.f32.vlgmr.msra.gmra.mxu3 %v3067_v4 }
  0xcd   : > { %879 = vmatpush.msra.mxu3 %v878_v50 }
  0xce   : > { %651 = vmatmul.f32.vlgmr.msrb.gmra.mxu0 %v456_v21 }
  0xcf   : > { %911 = vmatpush.msrb.mxu0 %v875_v33  ;;  %885 = vmatpush.msra.mxu3 %v884_v55 }
  0xd0   : > { %690 = vmatmul.f32.vlgmr.msrb.gmra.mxu1 %v3067_v4 }
  0xd1   : > { %941 = vmatpush.msrb.mxu1 %v839_v26  ;;  %914 = vmatpush.msrb.mxu0 %v881_v49 }
  0xd3   : > { %943 = vmatpush.msrb.mxu1 %v841_v41 }
  0xd4   : > { %589 = vmatmul.f32.vlgmr.msra.gmra.mxu2 %v3067_v4  ;;  %620 = vmatmul.f32.gmra.mxu3 %v460_v19 }
  0xd5   : > { %840 = vmatpush.msra.mxu2 %v839_v26 }
  0xd6   : > { %659 = vmatmul.f32.gmra.mxu0 %v464_v44 }
  0xd7   : > { %842 = vmatpush.msra.mxu2 %v841_v41 }
  0xd8   : > { %694 = vmatmul.f32.gmra.mxu1 %v460_v19 }
  0xdc   : > { %593 = vmatmul.f32.gmra.mxu2 %v460_v19  ;;  %750 = vmatmul.f32.vlgmr.msrb.gmra.mxu3 %v454_v13 }
  0xdd   : > { %1003 = vmatpush.msrb.mxu3 %v839_v26 }
  0xde   : > { %783 = vmatmul.f32.vlgmr.msra.gmra.mxu0 %v3067_v4 }
  0xdf   : > { %1005 = vmatpush.msrb.mxu3 %v841_v41  ;;  %1036 = vmatpush.msra.mxu0 %v2993_v27 }
  0xe0   : > { %810 = vmatmul.f32.vlgmr.msra.gmra.mxu1 %v3067_v4 }
  0xe1   : > { %1075 = vmatpush.msra.mxu1 %v3021_v35  ;;  %1038 = vmatpush.msra.mxu0 %v3002_v30 }
  0xe3   : > { %1081 = vmatpush.msra.mxu1 %v3027_v37 }
  0xe4   : > { %720 = vmatmul.f32.vlgmr.msrb.gmra.mxu2 %v3070_v6  ;;  %756 = vmatmul.f32.gmra.mxu3 %v462_v28 }
  0xe5   : > { %974 = vmatpush.msrb.mxu2 %v876_v40 }
  0xe6   : > { %787 = vmatmul.f32.gmra.mxu0 %v460_v19 }
  0xe7   : > { %978 = vmatpush.msrb.mxu2 %v882_v52 }
  0xe8   : > { %814 = vmatmul.f32.gmra.mxu1 %v460_v19 }
  0xec   : > { %725 = vmatmul.f32.gmra.mxu2 %v461_v22  ;;  %887 = vmatmul.f32.vlgmr.msra.gmra.mxu3 %v2953_v7 }
  0xed   : > { %1137 = vmatpush.msra.mxu3 %v2993_v27 }
  0xee   : > { %917 = vmatmul.f32.vlgmr.msrb.gmra.mxu0 %v2959_v12 }
  0xef   : > { %1139 = vmatpush.msra.mxu3 %v3002_v30  ;;  %1170 = vmatpush.msrb.mxu0 %v3006_v31 }
  0xf0   : > { %947 = vmatmul.f32.vlgmr.msrb.gmra.mxu1 %v2965_v16 }
  0xf1   : > { %1199 = vmatpush.msrb.mxu1 %v2993_v27  ;;  %1174 = vmatpush.msrb.mxu0 %v3017_v34 }
  0xf3   : > { %1201 = vmatpush.msrb.mxu1 %v3002_v30 }
  0xf4   : > { %848 = vmatmul.f32.vlgmr.msra.gmra.mxu2 %v2974_v23  ;;  %891 = vmatmul.f32.gmra.mxu3 %v2956_v11 }
  0xf5   : > { %1107 = vmatpush.msra.mxu2 %v3000_v29 }
  0xf6   : > { %922 = vmatmul.f32.gmra.mxu0 %v2962_v15 }
  0xf7   : > { %1110 = vmatpush.msra.mxu2 %v3009_v32 }
  0xf8   : > { %953 = vmatmul.f32.gmra.mxu1 %v2972_v20 }
  0xfc   : > { %856 = vmatmul.f32.gmra.mxu2 %v2981_v25  ;;  %1007 = vmatmul.f32.vlgmr.msrb.gmra.mxu3 %v2953_v7 }
  0xfd   : > { %1269 = vmatpush.msrb.mxu3 %v3058_v51 }
  0xff   : > { %1275 = vmatpush.msrb.mxu3 %v3063_v54 }
 0x104   : > { %980 = vmatmul.f32.vlgmr.msrb.gmra.mxu2 %v2953_v7  ;;  %1011 = vmatmul.f32.gmra.mxu3 %v2956_v11 }
 0x105   : > { %1230 = vmatpush.msrb.mxu2 %v3035_v39 }
 0x107   : > { %1232 = vmatpush.msrb.mxu2 %v3041_v42 }
 0x10c   : > { %984 = vmatmul.f32.gmra.mxu2 %v2956_v11 }
 0x13b   : > { %v527_v57 = vpop.f32.mrf.mxu0 }
 0x13d   : > { %v557_v58 = vpop.f32.mrf.mxu1 }
 0x13f   : > { %v497_v56 = vpop.f32.mrf.mxu3 }
 0x143   : > { %v532_v61 = vpop.f32.mrf.mxu0 }
 0x145   : > { %v563_v62 = vpop.f32.mrf.mxu1 }
 0x147   : > { %v458_v59 = vpop.f32.mrf.mxu2  ;;  %v501_v60 = vpop.f32.mrf.mxu3 }
 0x148   : > { %v498_v63 = vadd.f32 %v497_v56, %v458_v59 }
 0x14a   : > { %v528_v2 = vadd.f32 %v527_v57, %v498_v63 }
 0x14b   : > { %v652_v3 = vpop.f32.mrf.mxu0 }
 0x14c   : > { %v558_v6 = vadd.f32 %v557_v58, %v528_v2 }
 0x14d   : > { %v691_v4 = vpop.f32.mrf.mxu1 }
 0x14e   : > { %v692_v28 = vadd.f32 %v691_v4, %v652_v3 }
 0x14f   : > { %v466_v0 = vpop.f32.mrf.mxu2  ;;  %v617_v1 = vpop.f32.mrf.mxu3 }
 0x150   : > { %v502_v5 = vadd.f32 %v501_v60, %v466_v0 }
 0x152   : > { %v533_v13 = vadd.f32 %v532_v61, %v502_v5 }
 0x153   : > { %v660_v18 = vpop.f32.mrf.mxu0 }
 0x154   : > { %v564_v17 = vadd.f32 %v563_v62, %v533_v13 }
 0x155   : > { %v695_v22 = vpop.f32.mrf.mxu1 }
 0x156   : > { %v696_v49 = vadd.f32 %v695_v22, %v660_v18 }
 0x157   : > { %v590_v8 = vpop.f32.mrf.mxu2  ;;  %v621_v9 = vpop.f32.mrf.mxu3 }
 0x158   : > { %v591_v10 = vadd.f32 %v590_v8, %v558_v6 }
 0x15a   : > { %v618_v14 = vadd.f32 %v617_v1, %v591_v10 }
 0x15b   : > { %v784_v38 = vpop.f32.mrf.mxu0 }
 0x15c   : > { %625 = vst.msk [vmem:[%s3126_s9] sm:$0xff] %vm624_vm1, %v618_v14 }
 0x15d   : > { %v811_v41 = vpop.f32.mrf.mxu1 }
 0x15f   : > { %v594_v19 = vpop.f32.mrf.mxu2  ;;  %v751_v24 = vpop.f32.mrf.mxu3 }
 0x160   : > { %v595_v21 = vadd.f32 %v594_v19, %v564_v17 }
 0x162   : > { %v622_v26 = vadd.f32 %v621_v9, %v595_v21 }
 0x163   : > { %v788_v56 = vpop.f32.mrf.mxu0 }
 0x164   : > { %2691 = vst.msk [vmem:[%s3126_s9 + $0x10] sm:$0xff] %vm624_vm1, %v622_v26 }
 0x165   : > { %v815_v59 = vpop.f32.mrf.mxu1 }
 0x167   : > { %v721_v33 = vpop.f32.mrf.mxu2  ;;  %v757_v44 = vpop.f32.mrf.mxu3 }
 0x168   : > { %v722_v36 = vadd.f32 %v721_v33, %v692_v28 }
 0x16a   : > { %v752_v40 = vadd.f32 %v751_v24, %v722_v36 }
 0x16b   : > { %v918_v62 = vpop.f32.mrf.mxu0 }
 0x16c   : > { %v785_v47 = vadd.f32 %v784_v38, %v752_v40 }
 0x16d   : > { %v948_v2 = vpop.f32.mrf.mxu1 }
 0x16e   : > { %v812_v50 = vadd.f32 %v811_v41, %v785_v47 }
 0x16f   : > { %v726_v52 = vpop.f32.mrf.mxu2  ;;  %v888_v57 = vpop.f32.mrf.mxu3 }
 0x170   : > { %2692 = vst.msk [vmem:[%s3126_s9 + $0x8] sm:$0xff] %vm624_vm1, %v812_v50  ;;  %v727_v53 = vadd.f32 %v726_v52, %v696_v49  ;;  %v2701_v49 = vld [vmem:[%s2938_s18 + $0x28] sm:$0xff] }
 0x171   : > { %v1426_v50 = vand.u32 4294901760, %v2701_v49 }
 0x172   : > { %v758_v55 = vadd.f32 %v757_v44, %v727_v53 }
 0x173   : > { %v923_v8 = vpop.f32.mrf.mxu0  ;;  %v1462_v53 = vsub.f32 %v2701_v49, %v1426_v50 }
 0x174   : > { %v789_v58 = vadd.f32 %v788_v56, %v758_v55  ;;  %v2700_v56 = vld [vmem:[%s2938_s18 + $0x20] sm:$0xff] }
 0x175   : > { %v954_v17 = vpop.f32.mrf.mxu1 }
 0x176   : > { %v816_v60 = vadd.f32 %v815_v59, %v789_v58  ;;  %v1428_v58 = vand.u32 4294901760, %v2700_v56 }
 0x177   : > { %v849_v61 = vpop.f32.mrf.mxu2  ;;  %v892_v63 = vpop.f32.mrf.mxu3 }
 0x178   : > { %2693 = vst.msk [vmem:[%s3126_s9 + $0x18] sm:$0xff] %vm624_vm1, %v816_v60  ;;  %v889_v0 = vadd.f32 %v888_v57, %v849_v61  ;;  %v1463_v57 = vand.u32 4294901760, %v1462_v53  ;;  %v1468_v61 = vsub.f32 %v2700_v56, %v1428_v58 }
 0x17a   : > { %v919_v3 = vadd.f32 %v918_v62, %v889_v0  ;;  %v1464_v60 = vsub.f32 %v1462_v53, %v1463_v57 }
 0x17c   : > { %v949_v5 = vadd.f32 %v948_v2, %v919_v3  ;;  %v1465_v62 = vand.u32 4294901760, %v1464_v60 }
 0x17f   : > { %v857_v1 = vpop.f32.mrf.mxu2  ;;  %v1008_v4 = vpop.f32.mrf.mxu3 }
 0x180   : > { %v893_v6 = vadd.f32 %v892_v63, %v857_v1  ;;  %v1469_v63 = vand.u32 4294901760, %v1468_v61 }
 0x182   : > { %v924_v13 = vadd.f32 %v923_v8, %v893_v6  ;;  %v1470_v0 = vsub.f32 %v1468_v61, %v1469_v63 }
 0x184   : > { %v955_v21 = vadd.f32 %v954_v17, %v924_v13  ;;  %v1471_v1 = vand.u32 4294901760, %v1470_v0 }
 0x187   : > { %v981_v9 = vpop.f32.mrf.mxu2  ;;  %v1012_v26 = vpop.f32.mrf.mxu3 }
 0x188   : > { %v982_v10 = vadd.f32 %v981_v9, %v949_v5 }
 0x18a   : > { %v1009_v14 = vadd.f32 %v1008_v4, %v982_v10 }
 0x18c   : > { %v1016_v18 = vsel %vm231_vm0, %v1009_v14, 0 }
 0x18d   : > { %v3137_v19 = vand.u32 4294901760, %v1016_v18 }
 0x18f   : > { %v3140_v22 = vsub.f32 %v1016_v18, %v3137_v19  ;;  %v985_v24 = vpop.f32.mrf.mxu2  ;;  %1083 = vmatmul.f32.vlgmr.msra.gmra.mxu1 %v3137_v19 }
 0x190   : > { %v986_v28 = vadd.f32 %v985_v24, %v955_v21  ;;  %1331 = vmatpush.msra.mxu1 %v3035_v39 }
 0x191   : > { %1113 = vmatmul.f32.vlgmr.msra.gmra.mxu2 %v3140_v22  ;;  %v1041_v33 = vand.u32 4294901760, %v3140_v22 }
 0x192   : > { %v1013_v36 = vadd.f32 %v1012_v26, %v986_v28  ;;  %1364 = vmatpush.msra.mxu2 %v3048_v45  ;;  %1333 = vmatpush.msra.mxu1 %v3041_v42 }
 0x193   : > { %1143 = vmatmul.f32.vlgmr.msra.gmra.mxu3 %v1041_v33  ;;  %v1042_v38 = vsub.f32 %v3140_v22, %v1041_v33 }
 0x194   : > { %v1019_v40 = vsel %vm231_vm0, %v1013_v36, 0  ;;  %1393 = vmatpush.msra.mxu3 %v3035_v39  ;;  %1368 = vmatpush.msra.mxu2 %v3056_v48 }
 0x195   : > { %v1047_v41 = vand.u32 4294901760, %v1019_v40  ;;  %v1043_v44 = vand.u32 4294901760, %v1042_v38 }
 0x196   : > { %1395 = vmatpush.msra.mxu3 %v3041_v42 }
 0x197   : > { %v1048_v47 = vsub.f32 %v1019_v40, %v1047_v41  ;;  %1044 = vmatmul.f32.vlgmr.msra.gmra.mxu0 %v1043_v44  ;;  %1087 = vmatmul.f32.gmra.mxu1 %v1047_v41 }
 0x198   : > { %1301 = vmatpush.msra.mxu0 %v3044_v43 }
 0x199   : > { %1118 = vmatmul.f32.gmra.mxu2 %v1048_v47  ;;  %v1049_v52 = vand.u32 4294901760, %v1048_v47 }
 0x19a   : > { %1304 = vmatpush.msra.mxu0 %v3051_v46 }
 0x19b   : > { %1149 = vmatmul.f32.gmra.mxu3 %v1049_v52  ;;  %v1050_v55 = vsub.f32 %v1048_v47, %v1049_v52 }
 0x19d   : > { %v1051_v59 = vand.u32 4294901760, %v1050_v55 }
 0x19f   : > { %1052 = vmatmul.f32.gmra.mxu0 %v1051_v59  ;;  %1203 = vmatmul.f32.vlgmr.msrb.gmra.mxu1 %v3137_v19 }
 0x1a0   : > { %1466 = vmatpush.msrb.mxu1 %v1465_v62 }
 0x1a1   : > { %1238 = vmatmul.f32.vlgmr.msrb.gmra.mxu2 %v1043_v44 }
 0x1a2   : > { %1498 = vmatpush.msrb.mxu2 %v1462_v53  ;;  %1472 = vmatpush.msrb.mxu1 %v1471_v1 }
 0x1a3   : > { %1277 = vmatmul.f32.vlgmr.msrb.gmra.mxu3 %v3137_v19 }
 0x1a4   : > { %1528 = vmatpush.msrb.mxu3 %v1426_v50  ;;  %1501 = vmatpush.msrb.mxu2 %v1468_v61 }
 0x1a6   : > { %1530 = vmatpush.msrb.mxu3 %v1428_v58 }
 0x1a7   : > { %1176 = vmatmul.f32.vlgmr.msrb.gmra.mxu0 %v3137_v19  ;;  %1207 = vmatmul.f32.gmra.mxu1 %v1047_v41 }
 0x1a8   : > { %1427 = vmatpush.msrb.mxu0 %v1426_v50 }
 0x1a9   : > { %1246 = vmatmul.f32.gmra.mxu2 %v1051_v59 }
 0x1aa   : > { %1429 = vmatpush.msrb.mxu0 %v1428_v58 }
 0x1ab   : > { %1281 = vmatmul.f32.gmra.mxu3 %v1047_v41 }
 0x1af   : > { %1180 = vmatmul.f32.gmra.mxu0 %v1047_v41  ;;  %1337 = vmatmul.f32.vlgmr.msra.gmra.mxu1 %v1041_v33 }
 0x1b0   : > { %1590 = vmatpush.msra.mxu1 %v1426_v50 }
 0x1b1   : > { %1370 = vmatmul.f32.vlgmr.msra.gmra.mxu2 %v3137_v19 }
 0x1b2   : > { %1592 = vmatpush.msra.mxu1 %v1428_v58  ;;  %1623 = vmatpush.msra.mxu2 %v2993_v27 }
 0x1b3   : > { %1397 = vmatmul.f32.vlgmr.msra.gmra.mxu3 %v3137_v19 }
 0x1b4   : > { %1662 = vmatpush.msra.mxu3 %v3021_v35  ;;  %1625 = vmatpush.msra.mxu2 %v3002_v30 }
 0x1b6   : > { %1668 = vmatpush.msra.mxu3 %v3027_v37 }
 0x1b7   : > { %1307 = vmatmul.f32.vlgmr.msra.gmra.mxu0 %v3140_v22  ;;  %1343 = vmatmul.f32.gmra.mxu1 %v1049_v52 }
 0x1b8   : > { %1561 = vmatpush.msra.mxu0 %v1463_v57 }
 0x1b9   : > { %1374 = vmatmul.f32.gmra.mxu2 %v1047_v41 }
 0x1ba   : > { %1565 = vmatpush.msra.mxu0 %v1469_v63 }
 0x1bb   : > { %1401 = vmatmul.f32.gmra.mxu3 %v1047_v41 }
 0x1bf   : > { %1312 = vmatmul.f32.gmra.mxu0 %v1048_v47  ;;  %1474 = vmatmul.f32.vlgmr.msrb.gmra.mxu1 %v2953_v7 }
 0x1c0   : > { %1724 = vmatpush.msrb.mxu1 %v2993_v27 }
 0x1c1   : > { %1504 = vmatmul.f32.vlgmr.msrb.gmra.mxu2 %v2959_v12 }
 0x1c2   : > { %1726 = vmatpush.msrb.mxu1 %v3002_v30  ;;  %1757 = vmatpush.msrb.mxu2 %v3006_v31 }
 0x1c3   : > { %1534 = vmatmul.f32.vlgmr.msrb.gmra.mxu3 %v2965_v16 }
 0x1c4   : > { %1786 = vmatpush.msrb.mxu3 %v2993_v27  ;;  %1761 = vmatpush.msrb.mxu2 %v3017_v34 }
 0x1c6   : > { %1788 = vmatpush.msrb.mxu3 %v3002_v30 }
 0x1c7   : > { %1435 = vmatmul.f32.vlgmr.msrb.gmra.mxu0 %v2974_v23  ;;  %1478 = vmatmul.f32.gmra.mxu1 %v2956_v11 }
 0x1c8   : > { %1694 = vmatpush.msrb.mxu0 %v3000_v29 }
 0x1c9   : > { %1509 = vmatmul.f32.gmra.mxu2 %v2962_v15 }
 0x1ca   : > { %1697 = vmatpush.msrb.mxu0 %v3009_v32 }
 0x1cb   : > { %1540 = vmatmul.f32.gmra.mxu3 %v2972_v20 }
 0x1cf   : > { %1443 = vmatmul.f32.gmra.mxu0 %v2981_v25  ;;  %1594 = vmatmul.f32.vlgmr.msra.gmra.mxu1 %v2953_v7 }
 0x1d0   : > { %1856 = vmatpush.msra.mxu1 %v3058_v51 }
 0x1d2   : > { %1862 = vmatpush.msra.mxu1 %v3063_v54 }
 0x1d7   : > { %1567 = vmatmul.f32.vlgmr.msra.gmra.mxu0 %v2953_v7  ;;  %1598 = vmatmul.f32.gmra.mxu1 %v2956_v11 }
 0x1d8   : > { %1817 = vmatpush.msra.mxu0 %v3035_v39 }
 0x1da   : > { %1819 = vmatpush.msra.mxu0 %v3041_v42 }
 0x1df   : > { %1571 = vmatmul.f32.gmra.mxu0 %v2956_v11 }
 0x20c   : > { %v1084_v2 = vpop.f32.mrf.mxu1 }
 0x214   : > { %v1045_v3 = vpop.f32.mrf.mxu0  ;;  %v1088_v4 = vpop.f32.mrf.mxu1 }
 0x215   : > { %v1114_v5 = vpop.f32.mrf.mxu2  ;;  %v1085_v8 = vadd.f32 %v1084_v2, %v1045_v3 }
 0x216   : > { %v1144_v6 = vpop.f32.mrf.mxu3 }
 0x217   : > { %v1115_v17 = vadd.f32 %v1114_v5, %v1085_v8 }
 0x219   : > { %v1145_v18 = vadd.f32 %v1144_v6, %v1115_v17 }
 0x21c   : > { %v1053_v9 = vpop.f32.mrf.mxu0  ;;  %v1204_v10 = vpop.f32.mrf.mxu1 }
 0x21d   : > { %v1119_v13 = vpop.f32.mrf.mxu2  ;;  %v1089_v19 = vadd.f32 %v1088_v4, %v1053_v9 }
 0x21e   : > { %v1150_v14 = vpop.f32.mrf.mxu3 }
 0x21f   : > { %v1120_v33 = vadd.f32 %v1119_v13, %v1089_v19 }
 0x221   : > { %v1151_v38 = vadd.f32 %v1150_v14, %v1120_v33 }
 0x224   : > { %v1177_v21 = vpop.f32.mrf.mxu0  ;;  %v1208_v22 = vpop.f32.mrf.mxu1 }
 0x225   : > { %v1178_v24 = vadd.f32 %v1177_v21, %v1145_v18  ;;  %v1239_v26 = vpop.f32.mrf.mxu2 }
 0x226   : > { %v1278_v28 = vpop.f32.mrf.mxu3 }
 0x227   : > { %v1205_v36 = vadd.f32 %v1204_v10, %v1178_v24  ;;  %v1279_v52 = vadd.f32 %v1278_v28, %v1239_v26 }
 0x229   : > { %2696 = vst.msk [vmem:[%s3126_s9 + $0x20] sm:$0xff] %vm624_vm1, %v1205_v36 }
 0x22c   : > { %v1181_v40 = vpop.f32.mrf.mxu0  ;;  %v1338_v47 = vpop.f32.mrf.mxu1 }
 0x22d   : > { %v1182_v41 = vadd.f32 %v1181_v40, %v1151_v38  ;;  %v1247_v44 = vpop.f32.mrf.mxu2 }
 0x22e   : > { %v1282_v49 = vpop.f32.mrf.mxu3 }
 0x22f   : > { %v1209_v50 = vadd.f32 %v1208_v22, %v1182_v41  ;;  %v1283_v61 = vadd.f32 %v1282_v49, %v1247_v44 }
 0x231   : > { %2697 = vst.msk [vmem:[%s3126_s9 + $0x30] sm:$0xff] %vm624_vm1, %v1209_v50 }
 0x234   : > { %v1308_v53 = vpop.f32.mrf.mxu0  ;;  %v1344_v58 = vpop.f32.mrf.mxu1 }
 0x235   : > { %v1309_v55 = vadd.f32 %v1308_v53, %v1279_v52  ;;  %v1371_v56 = vpop.f32.mrf.mxu2 }
 0x236   : > { %v1398_v59 = vpop.f32.mrf.mxu3 }
 0x237   : > { %v1339_v57 = vadd.f32 %v1338_v47, %v1309_v55 }
 0x239   : > { %v1372_v60 = vadd.f32 %v1371_v56, %v1339_v57 }
 0x23b   : > { %v1399_v62 = vadd.f32 %v1398_v59, %v1372_v60 }
 0x23c   : > { %v1313_v63 = vpop.f32.mrf.mxu0  ;;  %v1475_v3 = vpop.f32.mrf.mxu1 }
 0x23d   : > { %2698 = vst.msk [vmem:[%s3126_s9 + $0x28] sm:$0xff] %vm624_vm1, %v1399_v62  ;;  %v1314_v0 = vadd.f32 %v1313_v63, %v1283_v61  ;;  %v1375_v2 = vpop.f32.mrf.mxu2  ;;  %v2707_v61 = vld [vmem:[%s2938_s18 + $0x38] sm:$0xff] }
 0x23e   : > { %v1402_v5 = vpop.f32.mrf.mxu3  ;;  %v2013_v62 = vand.u32 4294901760, %v2707_v61 }
 0x23f   : > { %v1345_v1 = vadd.f32 %v1344_v58, %v1314_v0 }
 0x240   : > { %v2049_v0 = vsub.f32 %v2707_v61, %v2013_v62 }
 0x241   : > { %v1376_v4 = vadd.f32 %v1375_v2, %v1345_v1 }
 0x242   : > { %v2050_v2 = vand.u32 4294901760, %v2049_v0 }
 0x243   : > { %v1403_v6 = vadd.f32 %v1402_v5, %v1376_v4 }
 0x244   : > { %v1436_v8 = vpop.f32.mrf.mxu0  ;;  %v1479_v10 = vpop.f32.mrf.mxu1 }
 0x245   : > { %2699 = vst.msk [vmem:[%s3126_s9 + $0x38] sm:$0xff] %vm624_vm1, %v1403_v6  ;;  %v1505_v9 = vpop.f32.mrf.mxu2  ;;  %v1476_v13 = vadd.f32 %v1475_v3, %v1436_v8  ;;  %v2706_v3 = vld [vmem:[%s2938_s18 + $0x30] sm:$0xff]  ;;  %v2051_v6 = vsub.f32 %v2049_v0, %v2050_v2 }
 0x246   : > { %v1535_v17 = vpop.f32.mrf.mxu3  ;;  %v2015_v5 = vand.u32 4294901760, %v2706_v3 }
 0x247   : > { %v1506_v18 = vadd.f32 %v1505_v9, %v1476_v13  ;;  %v2052_v9 = vand.u32 4294901760, %v2051_v6 }
 0x248   : > { %v2055_v8 = vsub.f32 %v2706_v3, %v2015_v5 }
 0x249   : > { %v1536_v21 = vadd.f32 %v1535_v17, %v1506_v18 }
 0x24c   : > { %v1444_v14 = vpop.f32.mrf.mxu0  ;;  %v1595_v19 = vpop.f32.mrf.mxu1 }
 0x24d   : > { %v1480_v22 = vadd.f32 %v1479_v10, %v1444_v14  ;;  %v1510_v24 = vpop.f32.mrf.mxu2  ;;  %v2056_v10 = vand.u32 4294901760, %v2055_v8 }
 0x24e   : > { %v1541_v38 = vpop.f32.mrf.mxu3 }
 0x24f   : > { %v1511_v33 = vadd.f32 %v1510_v24, %v1480_v22  ;;  %v2057_v13 = vsub.f32 %v2055_v8, %v2056_v10 }
 0x251   : > { %v1542_v44 = vadd.f32 %v1541_v38, %v1511_v33  ;;  %v2058_v14 = vand.u32 4294901760, %v2057_v13 }
 0x254   : > { %v1568_v26 = vpop.f32.mrf.mxu0  ;;  %v1599_v50 = vpop.f32.mrf.mxu1 }
 0x255   : > { %v1569_v28 = vadd.f32 %v1568_v26, %v1536_v21 }
 0x257   : > { %v1596_v36 = vadd.f32 %v1595_v19, %v1569_v28 }
 0x259   : > { %v1603_v40 = vsel %vm231_vm0, %v1596_v36, 0 }
 0x25a   : > { %v3200_v41 = vand.u32 4294901760, %v1603_v40 }
 0x25c   : > { %v3203_v47 = vsub.f32 %v1603_v40, %v3200_v41  ;;  %v1572_v49 = vpop.f32.mrf.mxu0  ;;  %1670 = vmatmul.f32.vlgmr.msra.gmra.mxu3 %v3200_v41 }
 0x25d   : > { %v1573_v52 = vadd.f32 %v1572_v49, %v1542_v44  ;;  %1918 = vmatpush.msra.mxu3 %v3035_v39 }
 0x25e   : > { %1700 = vmatmul.f32.vlgmr.msrb.gmra.mxu0 %v3203_v47  ;;  %v1628_v53 = vand.u32 4294901760, %v3203_v47 }
 0x25f   : > { %v1600_v55 = vadd.f32 %v1599_v50, %v1573_v52  ;;  %1920 = vmatpush.msra.mxu3 %v3041_v42  ;;  %1951 = vmatpush.msrb.mxu0 %v3048_v45 }
 0x260   : > { %1730 = vmatmul.f32.vlgmr.msrb.gmra.mxu1 %v1628_v53  ;;  %v1629_v56 = vsub.f32 %v3203_v47, %v1628_v53 }
 0x261   : > { %v1606_v57 = vsel %vm231_vm0, %v1600_v55, 0  ;;  %1955 = vmatpush.msrb.mxu0 %v3056_v48  ;;  %1980 = vmatpush.msrb.mxu1 %v3035_v39 }
 0x262   : > { %v1634_v58 = vand.u32 4294901760, %v1606_v57  ;;  %v1630_v59 = vand.u32 4294901760, %v1629_v56 }
 0x263   : > { %1982 = vmatpush.msrb.mxu1 %v3041_v42 }
 0x264   : > { %v1635_v60 = vsub.f32 %v1606_v57, %v1634_v58  ;;  %1631 = vmatmul.f32.vlgmr.msra.gmra.mxu2 %v1630_v59  ;;  %1674 = vmatmul.f32.gmra.mxu3 %v1634_v58 }
 0x265   : > { %1888 = vmatpush.msra.mxu2 %v3044_v43 }
 0x266   : > { %1705 = vmatmul.f32.gmra.mxu0 %v1635_v60  ;;  %v1636_v63 = vand.u32 4294901760, %v1635_v60 }
 0x267   : > { %1891 = vmatpush.msra.mxu2 %v3051_v46 }
 0x268   : > { %1736 = vmatmul.f32.gmra.mxu1 %v1636_v63  ;;  %v1637_v1 = vsub.f32 %v1635_v60, %v1636_v63 }
 0x26a   : > { %v1638_v4 = vand.u32 4294901760, %v1637_v1 }
 0x26c   : > { %1639 = vmatmul.f32.gmra.mxu2 %v1638_v4  ;;  %1790 = vmatmul.f32.vlgmr.msrb.gmra.mxu3 %v3200_v41 }
 0x26d   : > { %2053 = vmatpush.msrb.mxu3 %v2052_v9 }
 0x26e   : > { %1825 = vmatmul.f32.vlgmr.msra.gmra.mxu0 %v1630_v59 }
 0x26f   : > { %2085 = vmatpush.msra.mxu0 %v2049_v0  ;;  %2059 = vmatpush.msrb.mxu3 %v2058_v14 }
 0x270   : > { %1864 = vmatmul.f32.vlgmr.msra.gmra.mxu1 %v3200_v41 }
 0x271   : > { %2115 = vmatpush.msra.mxu1 %v2013_v62  ;;  %2088 = vmatpush.msra.mxu0 %v2055_v8 }
 0x273   : > { %2117 = vmatpush.msra.mxu1 %v2015_v5 }
 0x274   : > { %1763 = vmatmul.f32.vlgmr.msrb.gmra.mxu2 %v3200_v41  ;;  %1794 = vmatmul.f32.gmra.mxu3 %v1634_v58 }
 0x275   : > { %2014 = vmatpush.msrb.mxu2 %v2013_v62 }
 0x276   : > { %1833 = vmatmul.f32.gmra.mxu0 %v1638_v4 }
 0x277   : > { %2016 = vmatpush.msrb.mxu2 %v2015_v5 }
 0x278   : > { %1868 = vmatmul.f32.gmra.mxu1 %v1634_v58 }
 0x27c   : > { %1767 = vmatmul.f32.gmra.mxu2 %v1634_v58  ;;  %1924 = vmatmul.f32.vlgmr.msra.gmra.mxu3 %v1628_v53 }
 0x27d   : > { %2177 = vmatpush.msra.mxu3 %v2013_v62 }
 0x27e   : > { %1957 = vmatmul.f32.vlgmr.msrb.gmra.mxu0 %v3200_v41 }
 0x27f   : > { %2179 = vmatpush.msra.mxu3 %v2015_v5  ;;  %2210 = vmatpush.msrb.mxu0 %v2993_v27 }
 0x280   : > { %1984 = vmatmul.f32.vlgmr.msrb.gmra.mxu1 %v3200_v41 }
 0x281   : > { %2249 = vmatpush.msrb.mxu1 %v3021_v35  ;;  %2212 = vmatpush.msrb.mxu0 %v3002_v30 }
 0x283   : > { %2255 = vmatpush.msrb.mxu1 %v3027_v37 }
 0x284   : > { %1894 = vmatmul.f32.vlgmr.msra.gmra.mxu2 %v3203_v47  ;;  %1930 = vmatmul.f32.gmra.mxu3 %v1636_v63 }
 0x285   : > { %2148 = vmatpush.msra.mxu2 %v2050_v2 }
 0x286   : > { %1961 = vmatmul.f32.gmra.mxu0 %v1634_v58 }
 0x287   : > { %2152 = vmatpush.msra.mxu2 %v2056_v10 }
 0x288   : > { %1988 = vmatmul.f32.gmra.mxu1 %v1634_v58 }
 0x28c   : > { %1899 = vmatmul.f32.gmra.mxu2 %v1635_v60  ;;  %2061 = vmatmul.f32.vlgmr.msrb.gmra.mxu3 %v2953_v7 }
 0x28d   : > { %2311 = vmatpush.msrb.mxu3 %v2993_v27 }
 0x28e   : > { %2091 = vmatmul.f32.vlgmr.msra.gmra.mxu0 %v2959_v12 }
 0x28f   : > { %2313 = vmatpush.msrb.mxu3 %v3002_v30  ;;  %2344 = vmatpush.msra.mxu0 %v3006_v31 }
 0x290   : > { %2121 = vmatmul.f32.vlgmr.msra.gmra.mxu1 %v2965_v16 }
 0x291   : > { %2373 = vmatpush.msra.mxu1 %v2993_v27  ;;  %2348 = vmatpush.msra.mxu0 %v3017_v34 }
 0x293   : > { %2375 = vmatpush.msra.mxu1 %v3002_v30 }
 0x294   : > { %2022 = vmatmul.f32.vlgmr.msrb.gmra.mxu2 %v2974_v23  ;;  %2065 = vmatmul.f32.gmra.mxu3 %v2956_v11 }
 0x295   : > { %2281 = vmatpush.msrb.mxu2 %v3000_v29 }
 0x296   : > { %2096 = vmatmul.f32.gmra.mxu0 %v2962_v15 }
 0x297   : > { %2284 = vmatpush.msrb.mxu2 %v3009_v32 }
 0x298   : > { %2127 = vmatmul.f32.gmra.mxu1 %v2972_v20 }
 0x29c   : > { %2030 = vmatmul.f32.gmra.mxu2 %v2981_v25  ;;  %2181 = vmatmul.f32.vlgmr.msra.gmra.mxu3 %v2953_v7 }
 0x29d   : > { %2443 = vmatpush.msra.mxu3 %v3058_v51 }
 0x29f   : > { %2449 = vmatpush.msra.mxu3 %v3063_v54 }
 0x2a4   : > { %2154 = vmatmul.f32.vlgmr.msra.gmra.mxu2 %v2953_v7  ;;  %2185 = vmatmul.f32.gmra.mxu3 %v2956_v11 }
 0x2a5   : > { %2404 = vmatpush.msra.mxu2 %v3035_v39 }
 0x2a7   : > { %2406 = vmatpush.msra.mxu2 %v3041_v42 }
 0x2ac   : > { %2158 = vmatmul.f32.gmra.mxu2 %v2956_v11 }
 0x2db   : > { %v1701_v15 = vpop.f32.mrf.mxu0 }
 0x2dd   : > { %v1731_v16 = vpop.f32.mrf.mxu1 }
 0x2df   : > { %v1671_v12 = vpop.f32.mrf.mxu3 }
 0x2e3   : > { %v1706_v25 = vpop.f32.mrf.mxu0 }
 0x2e5   : > { %v1737_v27 = vpop.f32.mrf.mxu1 }
 0x2e7   : > { %v1632_v20 = vpop.f32.mrf.mxu2  ;;  %v1675_v23 = vpop.f32.mrf.mxu3 }
 0x2e8   : > { %v1672_v29 = vadd.f32 %v1671_v12, %v1632_v20 }
 0x2ea   : > { %v1702_v7 = vadd.f32 %v1701_v15, %v1672_v29 }
 0x2eb   : > { %v1826_v32 = vpop.f32.mrf.mxu0 }
 0x2ec   : > { %v1732_v37 = vadd.f32 %v1731_v16, %v1702_v7 }
 0x2ed   : > { %v1865_v34 = vpop.f32.mrf.mxu1 }
 0x2ee   : > { %v1866_v36 = vadd.f32 %v1865_v34, %v1826_v32 }
 0x2ef   : > { %v1640_v30 = vpop.f32.mrf.mxu2  ;;  %v1791_v31 = vpop.f32.mrf.mxu3 }
 0x2f0   : > { %v1676_v35 = vadd.f32 %v1675_v23, %v1640_v30 }
 0x2f2   : > { %v1707_v17 = vadd.f32 %v1706_v25, %v1676_v35 }
 0x2f3   : > { %v1834_v21 = vpop.f32.mrf.mxu0 }
 0x2f4   : > { %v1738_v19 = vadd.f32 %v1737_v27, %v1707_v17 }
 0x2f5   : > { %v1869_v26 = vpop.f32.mrf.mxu1 }
 0x2f6   : > { %v1870_v52 = vadd.f32 %v1869_v26, %v1834_v21 }
 0x2f7   : > { %v1764_v51 = vpop.f32.mrf.mxu2  ;;  %v1795_v54 = vpop.f32.mrf.mxu3 }
 0x2f8   : > { %v1765_v11 = vadd.f32 %v1764_v51, %v1732_v37 }
 0x2fa   : > { %v1792_v18 = vadd.f32 %v1791_v31, %v1765_v11 }
 0x2fb   : > { %v1958_v41 = vpop.f32.mrf.mxu0 }
 0x2fc   : > { %2702 = vst.msk [vmem:[%s3126_s9 + $0x40] sm:$0xff] %vm624_vm1, %v1792_v18 }
 0x2fd   : > { %v1985_v47 = vpop.f32.mrf.mxu1 }
 0x2ff   : > { %v1768_v22 = vpop.f32.mrf.mxu2  ;;  %v1925_v28 = vpop.f32.mrf.mxu3 }
 0x300   : > { %v1769_v24 = vadd.f32 %v1768_v22, %v1738_v19 }
 0x302   : > { %v1796_v33 = vadd.f32 %v1795_v54, %v1769_v24 }
 0x303   : > { %v1962_v58 = vpop.f32.mrf.mxu0 }
 0x304   : > { %2703 = vst.msk [vmem:[%s3126_s9 + $0x50] sm:$0xff] %vm624_vm1, %v1796_v33 }
 0x305   : > { %v1989_v61 = vpop.f32.mrf.mxu1 }
 0x307   : > { %v1895_v38 = vpop.f32.mrf.mxu2  ;;  %v1931_v49 = vpop.f32.mrf.mxu3 }
 0x308   : > { %v1896_v40 = vadd.f32 %v1895_v38, %v1866_v36 }
 0x30a   : > { %v1926_v44 = vadd.f32 %v1925_v28, %v1896_v40 }
 0x30b   : > { %v2092_v0 = vpop.f32.mrf.mxu0 }
 0x30c   : > { %v1959_v50 = vadd.f32 %v1958_v41, %v1926_v44 }
 0x30d   : > { %v2122_v4 = vpop.f32.mrf.mxu1 }
 0x30e   : > { %v1986_v53 = vadd.f32 %v1985_v47, %v1959_v50 }
 0x30f   : > { %v1900_v55 = vpop.f32.mrf.mxu2  ;;  %v2062_v59 = vpop.f32.mrf.mxu3 }
 0x310   : > { %2704 = vst.msk [vmem:[%s3126_s9 + $0x48] sm:$0xff] %vm624_vm1, %v1986_v53  ;;  %v1901_v56 = vadd.f32 %v1900_v55, %v1870_v52 }
 0x312   : > { %v1932_v57 = vadd.f32 %v1931_v49, %v1901_v56 }
 0x313   : > { %v2097_v10 = vpop.f32.mrf.mxu0 }
 0x314   : > { %v1963_v60 = vadd.f32 %v1962_v58, %v1932_v57 }
 0x315   : > { %v2128_v16 = vpop.f32.mrf.mxu1 }
 0x316   : > { %v1990_v62 = vadd.f32 %v1989_v61, %v1963_v60 }
 0x317   : > { %v2023_v63 = vpop.f32.mrf.mxu2  ;;  %v2066_v1 = vpop.f32.mrf.mxu3 }
 0x318   : > { %2705 = vst.msk [vmem:[%s3126_s9 + $0x58] sm:$0xff] %vm624_vm1, %v1990_v62  ;;  %v2063_v2 = vadd.f32 %v2062_v59, %v2023_v63 }
 0x31a   : > { %v2093_v5 = vadd.f32 %v2092_v0, %v2063_v2 }
 0x31c   : > { %v2123_v8 = vadd.f32 %v2122_v4, %v2093_v5 }
 0x31f   : > { %v2031_v3 = vpop.f32.mrf.mxu2  ;;  %v2182_v6 = vpop.f32.mrf.mxu3 }
 0x320   : > { %v2067_v9 = vadd.f32 %v2066_v1, %v2031_v3 }
 0x322   : > { %v2098_v12 = vadd.f32 %v2097_v10, %v2067_v9 }
 0x324   : > { %v2129_v25 = vadd.f32 %v2128_v16, %v2098_v12 }
 0x327   : > { %v2155_v13 = vpop.f32.mrf.mxu2  ;;  %v2186_v30 = vpop.f32.mrf.mxu3 }
 0x328   : > { %v2156_v14 = vadd.f32 %v2155_v13, %v2123_v8 }
 0x32a   : > { %v2183_v15 = vadd.f32 %v2182_v6, %v2156_v14 }
 0x32c   : > { %v2190_v20 = vsel %vm231_vm0, %v2183_v15, 0 }
 0x32d   : > { %v2213_v23 = vand.u32 4294901760, %v2190_v20 }
 0x32f   : > { %v2214_v27 = vsub.f32 %v2190_v20, %v2213_v23  ;;  %v2159_v29 = vpop.f32.mrf.mxu2  ;;  %2257 = vmatmul.f32.vlgmr.msrb.gmra.mxu1 %v2213_v23 }
 0x330   : > { %v2160_v31 = vadd.f32 %v2159_v29, %v2129_v25  ;;  %2505 = vmatpush.msrb.mxu1 %v3035_v39 }
 0x331   : > { %v2215_v7 = vand.u32 4294901760, %v2214_v27  ;;  %2287 = vmatmul.f32.vlgmr.msrb.gmra.mxu2 %v2214_v27 }
 0x332   : > { %v2187_v32 = vadd.f32 %v2186_v30, %v2160_v31  ;;  %2538 = vmatpush.msrb.mxu2 %v3048_v45  ;;  %2507 = vmatpush.msrb.mxu1 %v3041_v42 }
 0x333   : > { %v2216_v34 = vsub.f32 %v2214_v27, %v2215_v7  ;;  %2317 = vmatmul.f32.vlgmr.msrb.gmra.mxu3 %v2215_v7 }
 0x334   : > { %v2193_v35 = vsel %vm231_vm0, %v2187_v32, 0  ;;  %2567 = vmatpush.msrb.mxu3 %v3035_v39  ;;  %2542 = vmatpush.msrb.mxu2 %v3056_v48 }
 0x335   : > { %v2221_v37 = vand.u32 4294901760, %v2193_v35  ;;  %v2217_v51 = vand.u32 4294901760, %v2216_v34 }
 0x336   : > { %2569 = vmatpush.msrb.mxu3 %v3041_v42 }
 0x337   : > { %v2222_v54 = vsub.f32 %v2193_v35, %v2221_v37  ;;  %2218 = vmatmul.f32.vlgmr.msrb.gmra.mxu0 %v2217_v51  ;;  %2261 = vmatmul.f32.gmra.mxu1 %v2221_v37 }
 0x338   : > { %2475 = vmatpush.msrb.mxu0 %v3044_v43 }
 0x339   : > { %2292 = vmatmul.f32.gmra.mxu2 %v2222_v54  ;;  %v2223_v45 = vand.u32 4294901760, %v2222_v54 }
 0x33a   : > { %2478 = vmatpush.msrb.mxu0 %v3051_v46 }
 0x33b   : > { %2323 = vmatmul.f32.gmra.mxu3 %v2223_v45  ;;  %v2224_v11 = vsub.f32 %v2222_v54, %v2223_v45 }
 0x33d   : > { %v2225_v17 = vand.u32 4294901760, %v2224_v11 }
 0x33f   : > { %2226 = vmatmul.f32.gmra.mxu0 %v2225_v17  ;;  %2377 = vmatmul.f32.vlgmr.msra.gmra.mxu1 %v2213_v23 }
 0x341   : > { %2412 = vmatmul.f32.vlgmr.msra.gmra.mxu2 %v2217_v51 }
 0x343   : > { %2451 = vmatmul.f32.vlgmr.msra.gmra.mxu3 %v2213_v23 }
 0x347   : > { %2350 = vmatmul.f32.vlgmr.msra.gmra.mxu0 %v2213_v23  ;;  %2381 = vmatmul.f32.gmra.mxu1 %v2221_v37 }
 0x349   : > { %2420 = vmatmul.f32.gmra.mxu2 %v2225_v17 }
 0x34b   : > { %2455 = vmatmul.f32.gmra.mxu3 %v2221_v37 }
 0x34f   : > { %2354 = vmatmul.f32.gmra.mxu0 %v2221_v37  ;;  %2511 = vmatmul.f32.vlgmr.msrb.gmra.mxu1 %v2215_v7 }
 0x351   : > { %2544 = vmatmul.f32.vlgmr.msrb.gmra.mxu2 %v2213_v23 }
 0x353   : > { %2571 = vmatmul.f32.vlgmr.msrb.gmra.mxu3 %v2213_v23 }
 0x357   : > { %2481 = vmatmul.f32.vlgmr.msrb.gmra.mxu0 %v2214_v27  ;;  %2517 = vmatmul.f32.gmra.mxu1 %v2223_v45 }
 0x359   : > { %2548 = vmatmul.f32.gmra.mxu2 %v2221_v37 }
 0x35b   : > { %2575 = vmatmul.f32.gmra.mxu3 %v2221_v37 }
 0x35f   : > { %2486 = vmatmul.f32.gmra.mxu0 %v2222_v54 }
 0x3ac   : > { %v2258_v39 = vpop.f32.mrf.mxu1 }
 0x3b4   : > { %v2219_v42 = vpop.f32.mrf.mxu0  ;;  %v2288_v43 = vpop.f32.mrf.mxu2 }
 0x3b5   : > { %v2262_v46 = vpop.f32.mrf.mxu1  ;;  %v2259_v18 = vadd.f32 %v2258_v39, %v2219_v42 }
 0x3b6   : > { %v2318_v48 = vpop.f32.mrf.mxu3 }
 0x3b7   : > { %v2289_v24 = vadd.f32 %v2288_v43, %v2259_v18 }
 0x3b9   : > { %v2319_v28 = vadd.f32 %v2318_v48, %v2289_v24 }
 0x3bc   : > { %v2227_v19 = vpop.f32.mrf.mxu0  ;;  %v2293_v21 = vpop.f32.mrf.mxu2 }
 0x3bd   : > { %v2378_v26 = vpop.f32.mrf.mxu1  ;;  %v2263_v33 = vadd.f32 %v2262_v46, %v2227_v19 }
 0x3be   : > { %v2324_v22 = vpop.f32.mrf.mxu3 }
 0x3bf   : > { %v2294_v44 = vadd.f32 %v2293_v21, %v2263_v33 }
 0x3c1   : > { %v2325_v50 = vadd.f32 %v2324_v22, %v2294_v44 }
 0x3c4   : > { %v2351_v36 = vpop.f32.mrf.mxu0  ;;  %v2413_v40 = vpop.f32.mrf.mxu2 }
 0x3c5   : > { %v2352_v38 = vadd.f32 %v2351_v36, %v2319_v28  ;;  %v2382_v49 = vpop.f32.mrf.mxu1 }
 0x3c6   : > { %v2452_v41 = vpop.f32.mrf.mxu3 }
 0x3c7   : > { %v2379_v47 = vadd.f32 %v2378_v26, %v2352_v38  ;;  %v2453_v58 = vadd.f32 %v2452_v41, %v2413_v40 }
 0x3c9   : > { %2708 = vst.msk [vmem:[%s3126_s9 + $0x60] sm:$0xff] %vm624_vm1, %v2379_v47 }
 0x3cc   : > { %v2355_v52 = vpop.f32.mrf.mxu0  ;;  %v2421_v55 = vpop.f32.mrf.mxu2 }
 0x3cd   : > { %v2356_v53 = vadd.f32 %v2355_v52, %v2325_v50  ;;  %v2512_v59 = vpop.f32.mrf.mxu1 }
 0x3ce   : > { %v2456_v56 = vpop.f32.mrf.mxu3 }
 0x3cf   : > { %v2383_v57 = vadd.f32 %v2382_v49, %v2356_v53  ;;  %v2457_v2 = vadd.f32 %v2456_v56, %v2421_v55 }
 0x3d1   : > { %2709 = vst.msk [vmem:[%s3126_s9 + $0x70] sm:$0xff] %vm624_vm1, %v2383_v57 }
 0x3d4   : > { %v2482_v60 = vpop.f32.mrf.mxu0  ;;  %v2545_v62 = vpop.f32.mrf.mxu2 }
 0x3d5   : > { %v2483_v61 = vadd.f32 %v2482_v60, %v2453_v58  ;;  %v2518_v6 = vpop.f32.mrf.mxu1 }
 0x3d6   : > { %v2572_v0 = vpop.f32.mrf.mxu3 }
 0x3d7   : > { %v2513_v63 = vadd.f32 %v2512_v59, %v2483_v61 }
 0x3d9   : > { %v2546_v1 = vadd.f32 %v2545_v62, %v2513_v63 }
 0x3db   : > { %v2573_v3 = vadd.f32 %v2572_v0, %v2546_v1 }
 0x3dc   : > { %v2487_v4 = vpop.f32.mrf.mxu0  ;;  %v2549_v9 = vpop.f32.mrf.mxu2 }
 0x3dd   : > { %2710 = vst.msk [vmem:[%s3126_s9 + $0x68] sm:$0xff] %vm624_vm1, %v2573_v3  ;;  %v2488_v5 = vadd.f32 %v2487_v4, %v2457_v2 }
 0x3de   : > { %v2576_v13 = vpop.f32.mrf.mxu3 }
 0x3df   : > { %v2519_v8 = vadd.f32 %v2518_v6, %v2488_v5 }
 0x3e1   : > { %v2550_v10 = vadd.f32 %v2549_v9, %v2519_v8 }
 0x3e3   : > { %v2577_v14 = vadd.f32 %v2576_v13, %v2550_v10 }
 0x3e5   : > { %2711 = vst.msk [vmem:[%s3126_s9 + $0x78] sm:$0xff] %vm624_vm1, %v2577_v14 }
 0x3e6 PF: > { %s16_s17 = sadd.s32 1, %s2853_s17   ;;  %s3304_s12 = smov %s2837_s13 }
 0x3e7   : > { %p13_p0 = scmp.ge.s32.totalorder %s16_s17, 4   ;;  %s3305_s13 = smov %s2841_s14 }
 0x3e8   : > { %s3306_s14 = smov %s2926_s24  ;;  %s3307_s15 = smov %s2849_s16 }
 0x3e9   : > { %s3308_s16 = smov %s3310_s19  ;;  %15 = sbr.rel (!%p13_p0) target bundleno = 4 (0x4), region = 91 }
 0x3ee   :  { %2613 = vsyncpa [#allocation3], 1 }
 0x3ef   :  { %2615 = vsyncpa [#allocation3 + $0x1], 1 }

</bundles_post_ra>
